<compile_context>
chip_gen: v7x
topology: tpu7x:2x2x1
jax: 0.10.0
libtpu: 0.0.40
codegen_flags: <defaults>
</compile_context>

<pallas_src>
import functools
import math

import jax
import jax.numpy as jnp
from jax.experimental import pallas as pl
from jax.experimental.pallas import tpu as pltpu


# Matmul operand dtype. Keep float32 for exact parity with the PyTorch
# reference; set to jnp.bfloat16 on v6e/v7x for ~2x MXU throughput and half
# the weight DMA (softmax / layernorm math stays in float32 either way).
MATMUL_DTYPE = jnp.float32


def _layernorm(x, gamma, beta, eps=1e-5):
    # PyTorch nn.LayerNorm: biased variance over the last dim, eps inside rsqrt.
    mean = jnp.mean(x, axis=-1, keepdims=True)
    var = jnp.mean((x - mean) ** 2, axis=-1, keepdims=True)
    return (x - mean) * jax.lax.rsqrt(var + eps) * gamma + beta


def _mm(a, b):
    return jnp.dot(a.astype(MATMUL_DTYPE), b.astype(MATMUL_DTYPE),
                   preferred_element_type=jnp.float32)


def _bmm(eq, a, b):
    # Leading-batch einsum -> batched MXU matmul, no relayouts.
    return jnp.einsum(eq, a.astype(MATMUL_DTYPE), b.astype(MATMUL_DTYPE),
                      preferred_element_type=jnp.float32)


def fused_encoder_kernel(
    x_ref, pe_ref,
    wq_ref, bq_ref, wk_ref, bk_ref, wv_ref, bv_ref, wo_ref, bo_ref,
    g1_ref, n1b_ref,
    w1_ref, b1_ref, w2_ref, b2_ref,
    g2_ref, n2b_ref,
    o_ref,
    *, num_heads,
):
    """One grid step = (one batch element, one encoder layer)."""
    layer = pl.program_id(1)

    _, S, D = o_ref.shape
    H = num_heads
    d_k = D // H
    scale = 1.0 / math.sqrt(d_k)

    # First layer step: seed the carried activation with embedding + positional
    # encoding. The output block stays resident in VMEM across the layer axis.
    @pl.when(layer == 0)
    def _():
        o_ref[...] = x_ref[...] + pe_ref[...]

    x = o_ref[0]                                     # (S, D) carried activation

    # ---- multi-head self-attention (per-head weights, leading-batch einsums) ----
    xb = jnp.broadcast_to(x, (H, S, D))              # cheap major-dim broadcast
    q = _bmm('hsd,hdk->hsk', xb, wq_ref[0]) + bq_ref[0]      # (H, S, d_k)
    k = _bmm('hsd,hdk->hsk', xb, wk_ref[0]) + bk_ref[0]
    v = _bmm('hsd,hdk->hsk', xb, wv_ref[0]) + bv_ref[0]

    # TODO(synk): optional attention `mask` is not implemented (the reference
    # forward is only ever called with mask=None).
    s = _bmm('hqd,hkd->hqk', q, k) * scale           # (H, S, S)
    s = s - jnp.max(s, axis=-1, keepdims=True)
    p = jnp.exp(s)
    p = p * pl.reciprocal(jnp.sum(p, axis=-1, keepdims=True), approx=True)

    oh = _bmm('hqk,hkd->hqd', p, v)                  # (H, S, d_k)
    # Head combine + output projection: sum_h oh[h] @ Wo[h]  (Wo[h]: (d_k, D)).
    attn_out = jnp.sum(_bmm('hqd,hdm->hqm', oh, wo_ref[0]), axis=0) + bo_ref[0]

    # Residual + LayerNorm 1 (dropout is identity in eval mode).
    x1 = _layernorm(x + attn_out, g1_ref[0], n1b_ref[0])

    # ---- position-wise FFN (hidden dim pre-padded to 128 lanes; exact) ----
    h1 = jnp.maximum(_mm(x1, w1_ref[0]) + b1_ref[0], 0.0)
    ff = _mm(h1, w2_ref[0]) + b2_ref[0]

    # Residual + LayerNorm 2 -> becomes the carried activation for layer+1.
    o_ref[0] = _layernorm(x1 + ff, g2_ref[0], n2b_ref[0]).astype(o_ref.dtype)


def pallas_transformer_encoder(tokens, embedding, pe, params, num_heads):
    """tokens: (B, S) int32. Returns (B, S, d_model) float32."""
    B, S = tokens.shape
    D = embedding.shape[1]
    L, H, _, d_k = params["wq_h"].shape
    assert H == num_heads and D == H * d_k
    assert pe.shape[0] >= S and D % 2 == 0

    # Glue: embedding gather is data-dependent (no rectangular BlockSpec).
    x = jnp.take(embedding, tokens, axis=0)          # (B, S, D)
    pe_s = pe[:S]                                    # (S, D) — added in-kernel

    p = params
    weight_args = (p["wq_h"], p["bq_h"], p["wk_h"], p["bk_h"],
                   p["wv_h"], p["bv_h"], p["wo_h"], p["bo"],
                   p["g1"], p["n1b"],
                   p["w1_t"], p["b1"], p["w2_t"], p["b2"],
                   p["g2"], p["n2b"])

    def wspec(arr):
        # One layer's slice of a stacked (L, ...) weight per inner grid step.
        zeros = (0,) * (arr.ndim - 1)
        return pl.BlockSpec((1,) + arr.shape[1:], lambda b, l: (l,) + zeros)

    in_specs = [
        pl.BlockSpec((1, S, D), lambda b, l: (b, 0, 0)),   # embedding output
        pl.BlockSpec((S, D), lambda b, l: (0, 0)),         # positional encoding
    ] + [wspec(w) for w in weight_args]

    kernel = functools.partial(fused_encoder_kernel, num_heads=num_heads)

    return pl.pallas_call(
        kernel,
        out_shape=jax.ShapeDtypeStruct((B, S, D), jnp.float32),
        grid=(B, L),                                   # batch (parallel) x layer (carry)
        in_specs=in_specs,
        out_specs=pl.BlockSpec((1, S, D), lambda b, l: (b, 0, 0)),
        compiler_params=pltpu.CompilerParams(
            dimension_semantics=("parallel", "arbitrary"),
            vmem_limit_bytes=32 * 1024 * 1024,
        ),
    )(x, pe_s, *weight_args)


@functools.partial(jax.jit, static_argnames=("num_heads",))
def transformer_encoder_forward(tokens, embedding, pe, params, *, num_heads):
    return pallas_transformer_encoder(tokens, embedding, pe, params, num_heads)


# ----------------------------- Parameter / PE construction -----------------------------

def make_positional_encoding(max_len, d_model):
    position = jnp.arange(max_len, dtype=jnp.float32)[:, None]
    div_term = jnp.exp(jnp.arange(0, d_model, 2, dtype=jnp.float32)
                       * (-math.log(10000.0) / d_model))
    pe = jnp.zeros((max_len, d_model), dtype=jnp.float32)
    pe = pe.at[:, 0::2].set(jnp.sin(position * div_term))
    pe = pe.at[:, 1::2].set(jnp.cos(position * div_term))
    return pe  # (max_len, d_model)


def init_params(key, vocab_size, d_model, num_heads, num_layers, d_ff):
    assert d_model % num_heads == 0, "d_model must be divisible by num_heads"
    H = num_heads
    d_k = d_model // H
    d_ff_pad = ((d_ff + 127) // 128) * 128            # lane-dense FFN hidden dim

    keys = jax.random.split(key, 1 + num_layers)
    embedding = jax.random.normal(keys[0], (vocab_size, d_model), jnp.float32)

    names = ("wq_h", "bq_h", "wk_h", "bk_h", "wv_h", "bv_h", "wo_h", "bo",
             "g1", "n1b", "w1_t", "b1", "w2_t", "b2", "g2", "n2b")
    per_layer = {n: [] for n in names}

    for li in range(num_layers):
        ks = jax.random.split(keys[1 + li], 6)
        s_d = 1.0 / math.sqrt(d_model)
        s_f = 1.0 / math.sqrt(d_ff)

        def lin(k, fan_in, fan_out, s):
            # stored pre-transposed: (fan_in, fan_out), so y = x @ W_t + b
            return jax.random.uniform(k, (fan_in, fan_out), jnp.float32, -s, s)

        wq_t = lin(ks[0], d_model, d_model, s_d)
        wk_t = lin(ks[1], d_model, d_model, s_d)
        wv_t = lin(ks[2], d_model, d_model, s_d)
        wo_t = lin(ks[3], d_model, d_model, s_d)
        w1_t = lin(ks[4], d_model, d_ff, s_d)
        w2_t = lin(ks[5], d_ff, d_model, s_f)

        # Per-head layouts built once here so the kernel never slices heads.
        per_layer["wq_h"].append(wq_t.reshape(d_model, H, d_k).transpose(1, 0, 2))
        per_layer["wk_h"].append(wk_t.reshape(d_model, H, d_k).transpose(1, 0, 2))
        per_layer["wv_h"].append(wv_t.reshape(d_model, H, d_k).transpose(1, 0, 2))
        per_layer["wo_h"].append(wo_t.reshape(H, d_k, d_model))
        per_layer["bq_h"].append(jnp.zeros((H, 1, d_k), jnp.float32))
        per_layer["bk_h"].append(jnp.zeros((H, 1, d_k), jnp.float32))
        per_layer["bv_h"].append(jnp.zeros((H, 1, d_k), jnp.float32))
        per_layer["bo"].append(jnp.zeros((1, d_model), jnp.float32))

        # FFN weights zero-padded along the hidden dim (mathematically exact).
        per_layer["w1_t"].append(
            jnp.zeros((d_model, d_ff_pad), jnp.float32).at[:, :d_ff].set(w1_t))
        per_layer["b1"].append(jnp.zeros((1, d_ff_pad), jnp.float32))
        per_layer["w2_t"].append(
            jnp.zeros((d_ff_pad, d_model), jnp.float32).at[:d_ff, :].set(w2_t))
        per_layer["b2"].append(jnp.zeros((1, d_model), jnp.float32))

        per_layer["g1"].append(jnp.ones((1, d_model), jnp.float32))
        per_layer["n1b"].append(jnp.zeros((1, d_model), jnp.float32))
        per_layer["g2"].append(jnp.ones((1, d_model), jnp.float32))
        per_layer["n2b"].append(jnp.zeros((1, d_model), jnp.float32))

    params = {k: jnp.stack(v, axis=0) for k, v in per_layer.items()}
    return embedding, params


# ----------------------------- Main -----------------------------

if __name__ == "__main__":
    vocab_size = 100
    d_model = 32
    num_heads = 4
    num_layers = 2
    d_ff = 64
    max_len = 64

    batch, seq = 2, 8

    key = jax.random.PRNGKey(0)
    k_tok, k_params = jax.random.split(key)

    tokens = jax.random.randint(k_tok, (batch, seq), 0, vocab_size, dtype=jnp.int32)
    embedding, params = init_params(k_params, vocab_size, d_model, num_heads,
                                    num_layers, d_ff)
    pe = make_positional_encoding(max_len, d_model)

    out = transformer_encoder_forward(tokens, embedding, pe, params,
                                      num_heads=num_heads)
    out = jax.block_until_ready(out)

    assert out.shape == (batch, seq, d_model)
    assert bool(jnp.all(jnp.isfinite(out)))
    print("KERNEL_OK")
</pallas_src>

<mosaic_0001>
module attributes {stable_mosaic.version = 11 : i64} {
  func.func @fused_encoder_kernel(%arg0: i32, %arg1: i32, %arg2: memref<1x8x32xf32, #tpu.memory_space<vmem>>, %arg3: memref<8x32xf32, #tpu.memory_space<vmem>>, %arg4: memref<1x4x32x8xf32, #tpu.memory_space<vmem>>, %arg5: memref<1x4x1x8xf32, #tpu.memory_space<vmem>>, %arg6: memref<1x4x32x8xf32, #tpu.memory_space<vmem>>, %arg7: memref<1x4x1x8xf32, #tpu.memory_space<vmem>>, %arg8: memref<1x4x32x8xf32, #tpu.memory_space<vmem>>, %arg9: memref<1x4x1x8xf32, #tpu.memory_space<vmem>>, %arg10: memref<1x4x8x32xf32, #tpu.memory_space<vmem>>, %arg11: memref<1x1x32xf32, #tpu.memory_space<vmem>>, %arg12: memref<1x1x32xf32, #tpu.memory_space<vmem>>, %arg13: memref<1x1x32xf32, #tpu.memory_space<vmem>>, %arg14: memref<1x32x128xf32, #tpu.memory_space<vmem>>, %arg15: memref<1x1x128xf32, #tpu.memory_space<vmem>>, %arg16: memref<1x128x32xf32, #tpu.memory_space<vmem>>, %arg17: memref<1x1x32xf32, #tpu.memory_space<vmem>>, %arg18: memref<1x1x32xf32, #tpu.memory_space<vmem>>, %arg19: memref<1x1x32xf32, #tpu.memory_space<vmem>>, %arg20: memref<1x8x32xf32, #tpu.memory_space<vmem>>) attributes {dimension_semantics = [#tpu.dimension_semantics<parallel>, #tpu.dimension_semantics<arbitrary>], iteration_bounds = array<i64: 2, 2>, scalar_prefetch = 0 : i64, scratch_operands = 0 : i64, tpu.core_type = #tpu.core_type<tc>, window_params = [{transform_indices = @transform_0, window_bounds = array<i64: 1, 8, 32>}, {pipeline_mode = #tpu.pipeline_mode<synchronous>, transform_indices = @transform_1, window_bounds = array<i64: 8, 32>}, {transform_indices = @transform_2, window_bounds = array<i64: 1, 4, 32, 8>}, {transform_indices = @transform_3, window_bounds = array<i64: 1, 4, 1, 8>}, {transform_indices = @transform_4, window_bounds = array<i64: 1, 4, 32, 8>}, {transform_indices = @transform_5, window_bounds = array<i64: 1, 4, 1, 8>}, {transform_indices = @transform_6, window_bounds = array<i64: 1, 4, 32, 8>}, {transform_indices = @transform_7, window_bounds = array<i64: 1, 4, 1, 8>}, {transform_indices = @transform_8, window_bounds = array<i64: 1, 4, 8, 32>}, {transform_indices = @transform_9, window_bounds = array<i64: 1, 1, 32>}, {transform_indices = @transform_10, window_bounds = array<i64: 1, 1, 32>}, {transform_indices = @transform_11, window_bounds = array<i64: 1, 1, 32>}, {transform_indices = @transform_12, window_bounds = array<i64: 1, 32, 128>}, {transform_indices = @transform_13, window_bounds = array<i64: 1, 1, 128>}, {transform_indices = @transform_14, window_bounds = array<i64: 1, 128, 32>}, {transform_indices = @transform_15, window_bounds = array<i64: 1, 1, 32>}, {transform_indices = @transform_16, window_bounds = array<i64: 1, 1, 32>}, {transform_indices = @transform_17, window_bounds = array<i64: 1, 1, 32>}, {transform_indices = @transform_18, window_bounds = array<i64: 1, 8, 32>}]} {
    %c0_i32 = arith.constant 0 : i32
    %0 = arith.cmpi eq, %arg1, %c0_i32 : i32
    %1 = arith.extui %0 : i1 to i32
    %c0_i32_0 = arith.constant 0 : i32
    %2 = arith.cmpi ne, %1, %c0_i32_0 : i32
    scf.if %2 {
      %c0_83 = arith.constant 0 : index
      %c0_84 = arith.constant 0 : index
      %c0_85 = arith.constant 0 : index
      %123 = vector.load %arg2[%c0_83, %c0_84, %c0_85] : memref<1x8x32xf32, #tpu.memory_space<vmem>>, vector<1x8x32xf32>
      %c0_86 = arith.constant 0 : index
      %c0_87 = arith.constant 0 : index
      %124 = vector.load %arg3[%c0_86, %c0_87] : memref<8x32xf32, #tpu.memory_space<vmem>>, vector<8x32xf32>
      %125 = vector.shape_cast %124 : vector<8x32xf32> to vector<1x8x32xf32>
      %126 = arith.addf %123, %125 : vector<1x8x32xf32>
      %c0_88 = arith.constant 0 : index
      %c0_89 = arith.constant 0 : index
      %c0_90 = arith.constant 0 : index
      %127 = vector.load %arg20[%c0_88, %c0_89, %c0_90] : memref<1x8x32xf32, #tpu.memory_space<vmem>>, vector<1x8x32xf32>
      tpu.vector_store %arg20[%c0_88, %c0_89, %c0_90], %126 {strides = array<i32>} : memref<1x8x32xf32, #tpu.memory_space<vmem>>, vector<1x8x32xf32>,
    } else {
    }
    %c0 = arith.constant 0 : index
    %c0_1 = arith.constant 0 : index
    %c0_2 = arith.constant 0 : index
    %3 = vector.load %arg20[%c0, %c0_1, %c0_2] : memref<1x8x32xf32, #tpu.memory_space<vmem>>, vector<1x8x32xf32>
    %4 = vector.shape_cast %3 : vector<1x8x32xf32> to vector<8x32xf32>
    %5 = vector.shape_cast %4 : vector<8x32xf32> to vector<1x8x32xf32>
    %6 = vector.broadcast %5 : vector<1x8x32xf32> to vector<4x8x32xf32>
    %c0_3 = arith.constant 0 : index
    %c0_4 = arith.constant 0 : index
    %c0_5 = arith.constant 0 : index
    %c0_6 = arith.constant 0 : index
    %7 = vector.load %arg4[%c0_3, %c0_4, %c0_5, %c0_6] : memref<1x4x32x8xf32, #tpu.memory_space<vmem>>, vector<1x4x32x8xf32>
    %8 = vector.shape_cast %7 : vector<1x4x32x8xf32> to vector<4x32x8xf32>
    "tpu.trace_start"() <{level = 10 : i32, message = "hsd,hdk->hsk"}> : () -> ()
    %cst = arith.constant dense<0.000000e+00> : vector<4x8x8xf32>
    %9 = tpu.matmul %6, %8, %cst {dimension_numbers = #tpu.dot_dimension_numbers<[2], [1], [1], [2], [0, 0, 0, 1, 1, 2], [0], [0]>} : vector<4x8x32xf32>, vector<4x32x8xf32>, vector<4x8x8xf32> -> vector<4x8x8xf32>
    "tpu.trace_stop"() : () -> ()
    %c0_7 = arith.constant 0 : index
    %c0_8 = arith.constant 0 : index
    %c0_9 = arith.constant 0 : index
    %c0_10 = arith.constant 0 : index
    %10 = vector.load %arg5[%c0_7, %c0_8, %c0_9, %c0_10] : memref<1x4x1x8xf32, #tpu.memory_space<vmem>>, vector<1x4x1x8xf32>
    %11 = vector.shape_cast %10 : vector<1x4x1x8xf32> to vector<4x1x8xf32>
    %12 = vector.broadcast %11 : vector<4x1x8xf32> to vector<4x8x8xf32>
    %13 = arith.addf %9, %12 : vector<4x8x8xf32>
    %c0_11 = arith.constant 0 : index
    %c0_12 = arith.constant 0 : index
    %c0_13 = arith.constant 0 : index
    %c0_14 = arith.constant 0 : index
    %14 = vector.load %arg6[%c0_11, %c0_12, %c0_13, %c0_14] : memref<1x4x32x8xf32, #tpu.memory_space<vmem>>, vector<1x4x32x8xf32>
    %15 = vector.shape_cast %14 : vector<1x4x32x8xf32> to vector<4x32x8xf32>
    "tpu.trace_start"() <{level = 10 : i32, message = "hsd,hdk->hsk"}> : () -> ()
    %cst_15 = arith.constant dense<0.000000e+00> : vector<4x8x8xf32>
    %16 = tpu.matmul %6, %15, %cst_15 {dimension_numbers = #tpu.dot_dimension_numbers<[2], [1], [1], [2], [0, 0, 0, 1, 1, 2], [0], [0]>} : vector<4x8x32xf32>, vector<4x32x8xf32>, vector<4x8x8xf32> -> vector<4x8x8xf32>
    "tpu.trace_stop"() : () -> ()
    %c0_16 = arith.constant 0 : index
    %c0_17 = arith.constant 0 : index
    %c0_18 = arith.constant 0 : index
    %c0_19 = arith.constant 0 : index
    %17 = vector.load %arg7[%c0_16, %c0_17, %c0_18, %c0_19] : memref<1x4x1x8xf32, #tpu.memory_space<vmem>>, vector<1x4x1x8xf32>
    %18 = vector.shape_cast %17 : vector<1x4x1x8xf32> to vector<4x1x8xf32>
    %19 = vector.broadcast %18 : vector<4x1x8xf32> to vector<4x8x8xf32>
    %20 = arith.addf %16, %19 : vector<4x8x8xf32>
    %c0_20 = arith.constant 0 : index
    %c0_21 = arith.constant 0 : index
    %c0_22 = arith.constant 0 : index
    %c0_23 = arith.constant 0 : index
    %21 = vector.load %arg8[%c0_20, %c0_21, %c0_22, %c0_23] : memref<1x4x32x8xf32, #tpu.memory_space<vmem>>, vector<1x4x32x8xf32>
    %22 = vector.shape_cast %21 : vector<1x4x32x8xf32> to vector<4x32x8xf32>
    "tpu.trace_start"() <{level = 10 : i32, message = "hsd,hdk->hsk"}> : () -> ()
    %cst_24 = arith.constant dense<0.000000e+00> : vector<4x8x8xf32>
    %23 = tpu.matmul %6, %22, %cst_24 {dimension_numbers = #tpu.dot_dimension_numbers<[2], [1], [1], [2], [0, 0, 0, 1, 1, 2], [0], [0]>} : vector<4x8x32xf32>, vector<4x32x8xf32>, vector<4x8x8xf32> -> vector<4x8x8xf32>
    "tpu.trace_stop"() : () -> ()
    %c0_25 = arith.constant 0 : index
    %c0_26 = arith.constant 0 : index
    %c0_27 = arith.constant 0 : index
    %c0_28 = arith.constant 0 : index
    %24 = vector.load %arg9[%c0_25, %c0_26, %c0_27, %c0_28] : memref<1x4x1x8xf32, #tpu.memory_space<vmem>>, vector<1x4x1x8xf32>
    %25 = vector.shape_cast %24 : vector<1x4x1x8xf32> to vector<4x1x8xf32>
    %26 = vector.broadcast %25 : vector<4x1x8xf32> to vector<4x8x8xf32>
    %27 = arith.addf %23, %26 : vector<4x8x8xf32>
    "tpu.trace_start"() <{level = 10 : i32, message = "hqd,hkd->hqk"}> : () -> ()
    %cst_29 = arith.constant dense<0.000000e+00> : vector<4x8x8xf32>
    %28 = tpu.matmul %13, %20, %cst_29 {dimension_numbers = #tpu.dot_dimension_numbers<[2], [2], [1], [1], [0, 0, 0, 1, 1, 1], [0], [0]>} : vector<4x8x8xf32>, vector<4x8x8xf32>, vector<4x8x8xf32> -> vector<4x8x8xf32>
    "tpu.trace_stop"() : () -> ()
    %cst_30 = arith.constant 0.353553385 : f32
    %29 = vector.broadcast %cst_30 : f32 to vector<4x8x8xf32>
    %30 = arith.mulf %28, %29 : vector<4x8x8xf32>
    %cst_31 = arith.constant dense<0xFF800000> : vector<4x8xf32>
    %31 = vector.multi_reduction <maximumf>, %30, %cst_31 [2] : vector<4x8x8xf32> to vector<4x8xf32>
    %32 = vector.shape_cast %31 : vector<4x8xf32> to vector<4x8x1xf32>
    %33 = vector.broadcast %32 : vector<4x8x1xf32> to vector<4x8x8xf32>
    %34 = arith.subf %30, %33 : vector<4x8x8xf32>
    %35 = math.exp %34 : vector<4x8x8xf32>
    %cst_32 = arith.constant dense<0.000000e+00> : vector<4x8xf32>
    %36 = vector.multi_reduction <add>, %35, %cst_32 [2] : vector<4x8x8xf32> to vector<4x8xf32>
    %37 = vector.shape_cast %36 : vector<4x8xf32> to vector<4x8x1xf32>
    %38 = tpu.reciprocal %37 {approx = true} : vector<4x8x1xf32> -> vector<4x8x1xf32>
    %39 = vector.broadcast %38 : vector<4x8x1xf32> to vector<4x8x8xf32>
    %40 = arith.mulf %35, %39 : vector<4x8x8xf32>
    "tpu.trace_start"() <{level = 10 : i32, message = "hqk,hkd->hqd"}> : () -> ()
    %cst_33 = arith.constant dense<0.000000e+00> : vector<4x8x8xf32>
    %41 = tpu.matmul %40, %27, %cst_33 {dimension_numbers = #tpu.dot_dimension_numbers<[2], [1], [1], [2], [0, 0, 0, 1, 1, 2], [0], [0]>} : vector<4x8x8xf32>, vector<4x8x8xf32>, vector<4x8x8xf32> -> vector<4x8x8xf32>
    "tpu.trace_stop"() : () -> ()
    %c0_34 = arith.constant 0 : index
    %c0_35 = arith.constant 0 : index
    %c0_36 = arith.constant 0 : index
    %c0_37 = arith.constant 0 : index
    %42 = vector.load %arg10[%c0_34, %c0_35, %c0_36, %c0_37] : memref<1x4x8x32xf32, #tpu.memory_space<vmem>>, vector<1x4x8x32xf32>
    %43 = vector.shape_cast %42 : vector<1x4x8x32xf32> to vector<4x8x32xf32>
    "tpu.trace_start"() <{level = 10 : i32, message = "hqd,hdm->hqm"}> : () -> ()
    %cst_38 = arith.constant dense<0.000000e+00> : vector<4x8x32xf32>
    %44 = tpu.matmul %41, %43, %cst_38 {dimension_numbers = #tpu.dot_dimension_numbers<[2], [1], [1], [2], [0, 0, 0, 1, 1, 2], [0], [0]>} : vector<4x8x8xf32>, vector<4x8x32xf32>, vector<4x8x32xf32> -> vector<4x8x32xf32>
    "tpu.trace_stop"() : () -> ()
    %cst_39 = arith.constant dense<0.000000e+00> : vector<8x32xf32>
    %45 = vector.multi_reduction <add>, %44, %cst_39 [0] : vector<4x8x32xf32> to vector<8x32xf32>
    %c0_40 = arith.constant 0 : index
    %c0_41 = arith.constant 0 : index
    %c0_42 = arith.constant 0 : index
    %46 = vector.load %arg11[%c0_40, %c0_41, %c0_42] : memref<1x1x32xf32, #tpu.memory_space<vmem>>, vector<1x1x32xf32>
    %47 = vector.shape_cast %46 : vector<1x1x32xf32> to vector<1x32xf32>
    %48 = vector.broadcast %47 : vector<1x32xf32> to vector<8x32xf32>
    %49 = arith.addf %45, %48 : vector<8x32xf32>
    %50 = arith.addf %4, %49 : vector<8x32xf32>
    %c0_43 = arith.constant 0 : index
    %c0_44 = arith.constant 0 : index
    %c0_45 = arith.constant 0 : index
    %51 = vector.load %arg12[%c0_43, %c0_44, %c0_45] : memref<1x1x32xf32, #tpu.memory_space<vmem>>, vector<1x1x32xf32>
    %52 = vector.shape_cast %51 : vector<1x1x32xf32> to vector<1x32xf32>
    %c0_46 = arith.constant 0 : index
    %c0_47 = arith.constant 0 : index
    %c0_48 = arith.constant 0 : index
    %53 = vector.load %arg13[%c0_46, %c0_47, %c0_48] : memref<1x1x32xf32, #tpu.memory_space<vmem>>, vector<1x1x32xf32>
    %54 = vector.shape_cast %53 : vector<1x1x32xf32> to vector<1x32xf32>
    %cst_49 = arith.constant dense<0.000000e+00> : vector<8xf32>
    %55 = vector.multi_reduction <add>, %50, %cst_49 [1] : vector<8x32xf32> to vector<8xf32>
    %56 = vector.shape_cast %55 : vector<8xf32> to vector<8x1xf32>
    %cst_50 = arith.constant 3.200000e+01 : f32
    %57 = vector.broadcast %cst_50 : f32 to vector<8x1xf32>
    %58 = arith.divf %56, %57 : vector<8x1xf32>
    %59 = vector.broadcast %58 : vector<8x1xf32> to vector<8x32xf32>
    %60 = arith.subf %50, %59 : vector<8x32xf32>
    %61 = arith.mulf %60, %60 : vector<8x32xf32>
    %cst_51 = arith.constant dense<0.000000e+00> : vector<8xf32>
    %62 = vector.multi_reduction <add>, %61, %cst_51 [1] : vector<8x32xf32> to vector<8xf32>
    %63 = vector.shape_cast %62 : vector<8xf32> to vector<8x1xf32>
    %cst_52 = arith.constant 3.200000e+01 : f32
    %64 = vector.broadcast %cst_52 : f32 to vector<8x1xf32>
    %65 = arith.divf %63, %64 : vector<8x1xf32>
    %66 = vector.broadcast %58 : vector<8x1xf32> to vector<8x32xf32>
    %67 = arith.subf %50, %66 : vector<8x32xf32>
    %cst_53 = arith.constant 9.99999974E-6 : f32
    %68 = vector.broadcast %cst_53 : f32 to vector<8x1xf32>
    %69 = arith.addf %65, %68 : vector<8x1xf32>
    %70 = math.rsqrt %69 : vector<8x1xf32>
    %71 = vector.broadcast %70 : vector<8x1xf32> to vector<8x32xf32>
    %72 = arith.mulf %67, %71 : vector<8x32xf32>
    %73 = vector.broadcast %52 : vector<1x32xf32> to vector<8x32xf32>
    %74 = arith.mulf %72, %73 : vector<8x32xf32>
    %75 = vector.broadcast %54 : vector<1x32xf32> to vector<8x32xf32>
    %76 = arith.addf %74, %75 : vector<8x32xf32>
    %c0_54 = arith.constant 0 : index
    %c0_55 = arith.constant 0 : index
    %c0_56 = arith.constant 0 : index
    %77 = vector.load %arg14[%c0_54, %c0_55, %c0_56] : memref<1x32x128xf32, #tpu.memory_space<vmem>>, vector<1x32x128xf32>
    %78 = vector.shape_cast %77 : vector<1x32x128xf32> to vector<32x128xf32>
    %cst_57 = arith.constant dense<0.000000e+00> : vector<8x128xf32>
    %79 = tpu.matmul %76, %78, %cst_57 {dimension_numbers = #tpu.dot_dimension_numbers<[1], [0], [0], [1], [0, 0, 1, 1], [], []>} : vector<8x32xf32>, vector<32x128xf32>, vector<8x128xf32> -> vector<8x128xf32>
    %c0_58 = arith.constant 0 : index
    %c0_59 = arith.constant 0 : index
    %c0_60 = arith.constant 0 : index
    %80 = vector.load %arg15[%c0_58, %c0_59, %c0_60] : memref<1x1x128xf32, #tpu.memory_space<vmem>>, vector<1x1x128xf32>
    %81 = vector.shape_cast %80 : vector<1x1x128xf32> to vector<1x128xf32>
    %82 = vector.broadcast %81 : vector<1x128xf32> to vector<8x128xf32>
    %83 = arith.addf %79, %82 : vector<8x128xf32>
    %cst_61 = arith.constant 0.000000e+00 : f32
    %84 = vector.broadcast %cst_61 : f32 to vector<8x128xf32>
    %85 = arith.maximumf %83, %84 : vector<8x128xf32>
    %c0_62 = arith.constant 0 : index
    %c0_63 = arith.constant 0 : index
    %c0_64 = arith.constant 0 : index
    %86 = vector.load %arg16[%c0_62, %c0_63, %c0_64] : memref<1x128x32xf32, #tpu.memory_space<vmem>>, vector<1x128x32xf32>
    %87 = vector.shape_cast %86 : vector<1x128x32xf32> to vector<128x32xf32>
    %cst_65 = arith.constant dense<0.000000e+00> : vector<8x32xf32>
    %88 = tpu.matmul %85, %87, %cst_65 {dimension_numbers = #tpu.dot_dimension_numbers<[1], [0], [0], [1], [0, 0, 1, 1], [], []>} : vector<8x128xf32>, vector<128x32xf32>, vector<8x32xf32> -> vector<8x32xf32>
    %c0_66 = arith.constant 0 : index
    %c0_67 = arith.constant 0 : index
    %c0_68 = arith.constant 0 : index
    %89 = vector.load %arg17[%c0_66, %c0_67, %c0_68] : memref<1x1x32xf32, #tpu.memory_space<vmem>>, vector<1x1x32xf32>
    %90 = vector.shape_cast %89 : vector<1x1x32xf32> to vector<1x32xf32>
    %91 = vector.broadcast %90 : vector<1x32xf32> to vector<8x32xf32>
    %92 = arith.addf %88, %91 : vector<8x32xf32>
    %93 = arith.addf %76, %92 : vector<8x32xf32>
    %c0_69 = arith.constant 0 : index
    %c0_70 = arith.constant 0 : index
    %c0_71 = arith.constant 0 : index
    %94 = vector.load %arg18[%c0_69, %c0_70, %c0_71] : memref<1x1x32xf32, #tpu.memory_space<vmem>>, vector<1x1x32xf32>
    %95 = vector.shape_cast %94 : vector<1x1x32xf32> to vector<1x32xf32>
    %c0_72 = arith.constant 0 : index
    %c0_73 = arith.constant 0 : index
    %c0_74 = arith.constant 0 : index
    %96 = vector.load %arg19[%c0_72, %c0_73, %c0_74] : memref<1x1x32xf32, #tpu.memory_space<vmem>>, vector<1x1x32xf32>
    %97 = vector.shape_cast %96 : vector<1x1x32xf32> to vector<1x32xf32>
    %cst_75 = arith.constant dense<0.000000e+00> : vector<8xf32>
    %98 = vector.multi_reduction <add>, %93, %cst_75 [1] : vector<8x32xf32> to vector<8xf32>
    %99 = vector.shape_cast %98 : vector<8xf32> to vector<8x1xf32>
    %cst_76 = arith.constant 3.200000e+01 : f32
    %100 = vector.broadcast %cst_76 : f32 to vector<8x1xf32>
    %101 = arith.divf %99, %100 : vector<8x1xf32>
    %102 = vector.broadcast %101 : vector<8x1xf32> to vector<8x32xf32>
    %103 = arith.subf %93, %102 : vector<8x32xf32>
    %104 = arith.mulf %103, %103 : vector<8x32xf32>
    %cst_77 = arith.constant dense<0.000000e+00> : vector<8xf32>
    %105 = vector.multi_reduction <add>, %104, %cst_77 [1] : vector<8x32xf32> to vector<8xf32>
    %106 = vector.shape_cast %105 : vector<8xf32> to vector<8x1xf32>
    %cst_78 = arith.constant 3.200000e+01 : f32
    %107 = vector.broadcast %cst_78 : f32 to vector<8x1xf32>
    %108 = arith.divf %106, %107 : vector<8x1xf32>
    %109 = vector.broadcast %101 : vector<8x1xf32> to vector<8x32xf32>
    %110 = arith.subf %93, %109 : vector<8x32xf32>
    %cst_79 = arith.constant 9.99999974E-6 : f32
    %111 = vector.broadcast %cst_79 : f32 to vector<8x1xf32>
    %112 = arith.addf %108, %111 : vector<8x1xf32>
    %113 = math.rsqrt %112 : vector<8x1xf32>
    %114 = vector.broadcast %113 : vector<8x1xf32> to vector<8x32xf32>
    %115 = arith.mulf %110, %114 : vector<8x32xf32>
    %116 = vector.broadcast %95 : vector<1x32xf32> to vector<8x32xf32>
    %117 = arith.mulf %115, %116 : vector<8x32xf32>
    %118 = vector.broadcast %97 : vector<1x32xf32> to vector<8x32xf32>
    %119 = arith.addf %117, %118 : vector<8x32xf32>
    %c0_80 = arith.constant 0 : index
    %c0_81 = arith.constant 0 : index
    %c0_82 = arith.constant 0 : index
    %120 = vector.load %arg20[%c0_80, %c0_81, %c0_82] : memref<1x8x32xf32, #tpu.memory_space<vmem>>, vector<1x8x32xf32>
    %121 = vector.shape_cast %120 : vector<1x8x32xf32> to vector<8x32xf32>
    %122 = vector.shape_cast %119 : vector<8x32xf32> to vector<1x8x32xf32>
    tpu.vector_store %arg20[%c0_80, %c0_81, %c0_82], %122 {strides = array<i32>} : memref<1x8x32xf32, #tpu.memory_space<vmem>>, vector<1x8x32xf32>,
    return
  }
  func.func @transform_0(%arg0: i32, %arg1: i32) -> (i32, i32, i32) {
    %c0_i32 = arith.constant 0 : i32
    %c0_i32_0 = arith.constant 0 : i32
    %c0_i32_1 = arith.constant 0 : i32
    return %arg0, %c0_i32, %c0_i32_0 : i32, i32, i32
  }
  func.func @transform_1(%arg0: i32, %arg1: i32) -> (i32, i32) {
    %c0_i32 = arith.constant 0 : i32
    %c0_i32_0 = arith.constant 0 : i32
    %c0_i32_1 = arith.constant 0 : i32
    return %c0_i32, %c0_i32_0 : i32, i32
  }
  func.func @transform_2(%arg0: i32, %arg1: i32) -> (i32, i32, i32, i32) {
    %c0_i32 = arith.constant 0 : i32
    %c0_i32_0 = arith.constant 0 : i32
    %c0_i32_1 = arith.constant 0 : i32
    %c0_i32_2 = arith.constant 0 : i32
    return %arg1, %c0_i32, %c0_i32_0, %c0_i32_1 : i32, i32, i32, i32
  }
  func.func @transform_3(%arg0: i32, %arg1: i32) -> (i32, i32, i32, i32) {
    %c0_i32 = arith.constant 0 : i32
    %c0_i32_0 = arith.constant 0 : i32
    %c0_i32_1 = arith.constant 0 : i32
    %c0_i32_2 = arith.constant 0 : i32
    return %arg1, %c0_i32, %c0_i32_0, %c0_i32_1 : i32, i32, i32, i32
  }
  func.func @transform_4(%arg0: i32, %arg1: i32) -> (i32, i32, i32, i32) {
    %c0_i32 = arith.constant 0 : i32
    %c0_i32_0 = arith.constant 0 : i32
    %c0_i32_1 = arith.constant 0 : i32
    %c0_i32_2 = arith.constant 0 : i32
    return %arg1, %c0_i32, %c0_i32_0, %c0_i32_1 : i32, i32, i32, i32
  }
  func.func @transform_5(%arg0: i32, %arg1: i32) -> (i32, i32, i32, i32) {
    %c0_i32 = arith.constant 0 : i32
    %c0_i32_0 = arith.constant 0 : i32
    %c0_i32_1 = arith.constant 0 : i32
    %c0_i32_2 = arith.constant 0 : i32
    return %arg1, %c0_i32, %c0_i32_0, %c0_i32_1 : i32, i32, i32, i32
  }
  func.func @transform_6(%arg0: i32, %arg1: i32) -> (i32, i32, i32, i32) {
    %c0_i32 = arith.constant 0 : i32
    %c0_i32_0 = arith.constant 0 : i32
    %c0_i32_1 = arith.constant 0 : i32
    %c0_i32_2 = arith.constant 0 : i32
    return %arg1, %c0_i32, %c0_i32_0, %c0_i32_1 : i32, i32, i32, i32
  }
  func.func @transform_7(%arg0: i32, %arg1: i32) -> (i32, i32, i32, i32) {
    %c0_i32 = arith.constant 0 : i32
    %c0_i32_0 = arith.constant 0 : i32
    %c0_i32_1 = arith.constant 0 : i32
    %c0_i32_2 = arith.constant 0 : i32
    return %arg1, %c0_i32, %c0_i32_0, %c0_i32_1 : i32, i32, i32, i32
  }
  func.func @transform_8(%arg0: i32, %arg1: i32) -> (i32, i32, i32, i32) {
    %c0_i32 = arith.constant 0 : i32
    %c0_i32_0 = arith.constant 0 : i32
    %c0_i32_1 = arith.constant 0 : i32
    %c0_i32_2 = arith.constant 0 : i32
    return %arg1, %c0_i32, %c0_i32_0, %c0_i32_1 : i32, i32, i32, i32
  }
  func.func @transform_9(%arg0: i32, %arg1: i32) -> (i32, i32, i32) {
    %c0_i32 = arith.constant 0 : i32
    %c0_i32_0 = arith.constant 0 : i32
    %c0_i32_1 = arith.constant 0 : i32
    return %arg1, %c0_i32, %c0_i32_0 : i32, i32, i32
  }
  func.func @transform_10(%arg0: i32, %arg1: i32) -> (i32, i32, i32) {
    %c0_i32 = arith.constant 0 : i32
    %c0_i32_0 = arith.constant 0 : i32
    %c0_i32_1 = arith.constant 0 : i32
    return %arg1, %c0_i32, %c0_i32_0 : i32, i32, i32
  }
  func.func @transform_11(%arg0: i32, %arg1: i32) -> (i32, i32, i32) {
    %c0_i32 = arith.constant 0 : i32
    %c0_i32_0 = arith.constant 0 : i32
    %c0_i32_1 = arith.constant 0 : i32
    return %arg1, %c0_i32, %c0_i32_0 : i32, i32, i32
  }
  func.func @transform_12(%arg0: i32, %arg1: i32) -> (i32, i32, i32) {
    %c0_i32 = arith.constant 0 : i32
    %c0_i32_0 = arith.constant 0 : i32
    %c0_i32_1 = arith.constant 0 : i32
    return %arg1, %c0_i32, %c0_i32_0 : i32, i32, i32
  }
  func.func @transform_13(%arg0: i32, %arg1: i32) -> (i32, i32, i32) {
    %c0_i32 = arith.constant 0 : i32
    %c0_i32_0 = arith.constant 0 : i32
    %c0_i32_1 = arith.constant 0 : i32
    return %arg1, %c0_i32, %c0_i32_0 : i32, i32, i32
  }
  func.func @transform_14(%arg0: i32, %arg1: i32) -> (i32, i32, i32) {
    %c0_i32 = arith.constant 0 : i32
    %c0_i32_0 = arith.constant 0 : i32
    %c0_i32_1 = arith.constant 0 : i32
    return %arg1, %c0_i32, %c0_i32_0 : i32, i32, i32
  }
  func.func @transform_15(%arg0: i32, %arg1: i32) -> (i32, i32, i32) {
    %c0_i32 = arith.constant 0 : i32
    %c0_i32_0 = arith.constant 0 : i32
    %c0_i32_1 = arith.constant 0 : i32
    return %arg1, %c0_i32, %c0_i32_0 : i32, i32, i32
  }
  func.func @transform_16(%arg0: i32, %arg1: i32) -> (i32, i32, i32) {
    %c0_i32 = arith.constant 0 : i32
    %c0_i32_0 = arith.constant 0 : i32
    %c0_i32_1 = arith.constant 0 : i32
    return %arg1, %c0_i32, %c0_i32_0 : i32, i32, i32
  }
  func.func @transform_17(%arg0: i32, %arg1: i32) -> (i32, i32, i32) {
    %c0_i32 = arith.constant 0 : i32
    %c0_i32_0 = arith.constant 0 : i32
    %c0_i32_1 = arith.constant 0 : i32
    return %arg1, %c0_i32, %c0_i32_0 : i32, i32, i32
  }
  func.func @transform_18(%arg0: i32, %arg1: i32) -> (i32, i32, i32) {
    %c0_i32 = arith.constant 0 : i32
    %c0_i32_0 = arith.constant 0 : i32
    %c0_i32_1 = arith.constant 0 : i32
    return %arg0, %c0_i32, %c0_i32_0 : i32, i32, i32
  }
}

</mosaic_0001>

<bundles_post_ra>
// kernel: transformer_encoder_forward.1
= control target key start
LH: loop header
LB: loop body
LE: loop exit
PB: predicated region body
PF: predicated region fallthrough
CT: control target
= control target key end

     0   :  { %s4612_s0 = inlined_call_operand.vmem [shape: f32[2,8,32], index: 0, kind: input, shape index: {}]   ;;  %s4613_s1 = inlined_call_operand.vmem [shape: f32[8,32], index: 1, kind: input, shape index: {}]   ;;  %s4614_s2 = inlined_call_operand.vmem [shape: f32[2,4,32,8], index: 2, kind: input, shape index: {}]   ;;  %s4615_s3 = inlined_call_operand.vmem [shape: f32[2,4,1,8], index: 3, kind: input, shape index: {}]   ;;  %s4616_s4 = inlined_call_operand.vmem [shape: f32[2,4,32,8], index: 4, kind: input, shape index: {}]   ;;  %s4617_s5 = inlined_call_operand.vmem [shape: f32[2,4,1,8], index: 5, kind: input, shape index: {}]   ;;  %s4618_s6 = inlined_call_operand.vmem [shape: f32[2,4,32,8], index: 6, kind: input, shape index: {}]   ;;  %s4619_s7 = inlined_call_operand.vmem [shape: f32[2,4,1,8], index: 7, kind: input, shape index: {}]   ;;  %s4620_s8 = inlined_call_operand.vmem [shape: f32[2,4,8,32], index: 8, kind: input, shape index: {}]   ;;  %s4621_s9 = inlined_call_operand.vmem [shape: f32[2,1,32], index: 9, kind: input, shape index: {}]   ;;  %s4622_s10 = inlined_call_operand.vmem [shape: f32[2,1,32], index: 10, kind: input, shape index: {}]   ;;  %s4623_s11 = inlined_call_operand.vmem [shape: f32[2,1,32], index: 11, kind: input, shape index: {}]   ;;  %s4624_s12 = inlined_call_operand.vmem [shape: f32[2,32,128], index: 12, kind: input, shape index: {}]   ;;  %s4625_s13 = inlined_call_operand.vmem [shape: f32[2,1,128], index: 13, kind: input, shape index: {}]   ;;  %s4626_s14 = inlined_call_operand.vmem [shape: f32[2,128,32], index: 14, kind: input, shape index: {}]   ;;  %s4627_s15 = inlined_call_operand.vmem [shape: f32[2,1,32], index: 15, kind: input, shape index: {}]   ;;  %s4628_s16 = inlined_call_operand.vmem [shape: f32[2,1,32], index: 16, kind: input, shape index: {}]   ;;  %s4629_s17 = inlined_call_operand.vmem [shape: f32[2,1,32], index: 17, kind: input, shape index: {}]   ;;  %s4630_s18 = inlined_call_operand.hbm [shape: f32[2,8,32], index: 18, kind: output, shape index: {}]  }
   0x1   :  { %4650 = sst [smem:[#allocation22_spill]] %s4612_s0 }
   0x2   :  { %4651 = sst [smem:[#allocation23_spill]] %s4613_s1 }
   0x3   :  { %4652 = sst [smem:[#allocation24_spill]] %s4614_s2 }
   0x4   :  { %4653 = sst [smem:[#allocation25_spill]] %s4615_s3 }
   0x5   :  { %4654 = sst [smem:[#allocation26_spill]] %s4616_s4 }
   0x6   :  { %4655 = sst [smem:[#allocation27_spill]] %s4617_s5 }
   0x7   :  { %4656 = sst [smem:[#allocation28_spill]] %s4618_s6 }
   0x8   :  { %4657 = sst [smem:[#allocation29_spill]] %s4619_s7 }
   0x9   :  { %4658 = sst [smem:[#allocation30_spill]] %s4620_s8 }
   0xa   :  { %4659 = sst [smem:[#allocation31_spill]] %s4623_s11 }
   0xb   :  { %4660 = sst [smem:[#allocation32_spill]] %s4624_s12 }
   0xc   :  { %4661 = sst [smem:[#allocation33_spill]] %s4628_s16 }
   0xd   :  { %4662 = sst [smem:[#allocation34_spill]] %s4629_s17 }
   0xe   :  { %4663 = sst [smem:[#allocation35_spill]] %s4630_s18 }
   0xf   :  { %23 = vsyncpa [#allocation3], 0 }
  0x10   :  { %25 = vsyncpa [#allocation3 + $0x1], 0  ;;  %s4105_s27 = smov 0   ;;  %s4107_s28 = smov 0  }
  0x11   :  { %s4109_s29 = smov 0   ;;  %s4111_s30 = smov 0  }
  0x12   :  { %s4113_s0 = smov 0   ;;  %s4115_s19 = smov 0  }
  0x13   :  { %s4117_s1 = smov 0   ;;  %s4119_s20 = smov 0  }
  0x14 LB: > { %4664 = sst [smem:[#allocation5_spill]] %s3976_s27  ;;  %s3289_s21 = sadd.s32 4294967295, %s4004_s20   ;;  %s4004_s20 = sphi %s4119_s20, %s31_s20   ;;  %s4000_s1 = sphi %s4117_s1, %s4721_s1   ;;  %s3996_s19 = sphi %s4115_s19, %s4720_s19   ;;  %s3992_s0 = sphi %s4113_s0, %s4719_s0   ;;  %s3988_s30 = sphi %s4111_s30, %s4718_s30   ;;  %s3984_s29 = sphi %s4109_s29, %s4717_s29   ;;  %s3980_s28 = sphi %s4107_s28, %s4716_s28   ;;  %s3976_s27 = sphi %s4105_s27, %s4715_s27  }
  0x15   : > { %4665 = sst [smem:[#allocation6_spill]] %s3980_s28  ;;  %s3290_s22 = sadd.s32 4294967294, %s4004_s20  }
  0x16   : > { %4666 = sst [smem:[#allocation7_spill]] %s3984_s29  ;;  %s40_s2 = sadd.s32 1, %s3996_s19 }
  0x17   : > { %4667 = sst [smem:[#allocation8_spill]] %s3988_s30  ;;  %p41_p0 = scmp.ge.s32.totalorder %s40_s2, 2 }
  0x18   : > { %4668 = sst [smem:[#allocation9_spill]] %s3992_s0  ;;  %s43_s23 = sadd.s32 1, %s4000_s1 }
  0x19   : > { %4669 = sst [smem:[#allocation10_spill]] %s3996_s19  ;;  %p523_p1 = scmp.ne.s32.totalorder %s3984_s29, %s3980_s28 }
  0x1a   : > { %4670 = sst [smem:[#allocation11_spill]] %s4000_s1  ;;  %p524_p2 = scmp.eq.s32.totalorder %s3289_s21, 3 }
  0x1b   : > { %4671 = sst [smem:[#allocation12_spill]] %s4004_s20  ;;  %s4723_s2 = smov (%p41_p0, %s40_s2), 0 }
  0x1c   : > { %4672 = sst [smem:[#allocation13_spill]] %s4723_s2  ;;  %s4725_s23 = smov (!%p41_p0, %s43_s23), %s4000_s1 }
  0x1d   : > { %p4154_p3 = por %p524_p2, %p523_p1  ;;  %p529_p4 = scmp.ne.s32.totalorder %s3980_s28, %s3976_s27 }
  0x1e   : > { %p45_p5 = scmp.ge.s32.totalorder %s4725_s23, 2  ;;  %p530_p6 = scmp.eq.s32.totalorder %s3290_s22, 3 }
  0x1f   : > { %s4673_s24 = scalar_select %p4154_p3, 1, 0 }
  0x20   : > { %p3293_p7 = scmp.ge.s32.totalorder %s4004_s20, 1  ;;  %p669_p8 = scmp.lt.s32.totalorder %s4004_s20, 5 }
  0x21   : > { %4674 = sst [smem:[#allocation14_spill]] %s4673_s24  ;;  %s4727_s23 = smov (%p45_p5, %s4725_s23), 0 }
  0x22   : > { %4675 = sst [smem:[#allocation15_spill]] %s4727_s23  ;;  %p4164_p9 = por %p530_p6, %p529_p4 }
  0x23   : > { %p670_p10 = pnand %p3293_p7, %p669_p8  ;;  %s510_s26 = ssub.s32 %s4000_s1, %s4727_s23 }
  0x24   : > { %s4676_s25 = scalar_select %p4164_p9, 1, 0 }
  0x25   : > { %s513_s21 = sadd.s32 1, %s3984_s29  ;;  %p511_p11 = scmp.eq.s32.totalorder %s510_s26, 0 }
  0x26   : > { %4677 = sst [smem:[#allocation16_spill]] %s4676_s25  ;;  %673 = sbr.rel (%p670_p10) target bundleno = 2382 (0x94e), region = 92 }
  0x27   : > { %s4172_s2 = scalar_select %p511_p11, %s3984_s29, %s513_s21  }
  0x29   : > { %4678 = sst [smem:[#allocation17_spill]] %s4172_s2 }
  0x2d   : > { %s4640_s22 = sand.u32 1, %s3980_s28   ;;  %p785_p12 = scmp.lt.s32.totalorder %s3992_s0, 1 }
  0x2e   : > { %s3294_s19 = sshll.u32 %s4640_s22, 3  ;;  %p789_p13 = scmp.lt.s32.totalorder %s3988_s30, 1 }
  0x2f   : > { %s786_s27 = scalar_select %p785_p12, %s3992_s0, 1 }
  0x30   : > { %s4181_s25 = scalar_select %p789_p13, %s3988_s30, 1 }
  0x31   : > { %s3295_s26 = sshll.u32 %s786_s27, 3  ;;  %s4679_s1 = sld [smem:[#allocation22_spill]] }
  0x32   : > { %s3364_s29 = sshll.u32 %s4181_s25, 7  ;;  %s4680_s22 = sld [smem:[#allocation24_spill]] }
  0x33   : > { %s3298_s28 = sshll.u32 %s4181_s25, 2  ;;  %s4682_s3 = sld [smem:[#allocation25_spill]] }
  0x34   : > { %s4684_s4 = sld [smem:[#allocation26_spill]]  ;;  %s4685_s5 = sld [smem:[#allocation27_spill]] }
  0x35   : > { %s4687_s6 = sld [smem:[#allocation28_spill]]  ;;  %s4688_s7 = sld [smem:[#allocation29_spill]] }
  0x36   : > { %s4689_s8 = sld [smem:[#allocation30_spill]]  ;;  %s4692_s12 = sld [smem:[#allocation32_spill]] }
  0x37   : > { %s788_s2 = scalar_lea.vmem %s4679_s1, %s3295_s26  ;;  %s4248_s1 = scalar_lea.vmem %s4626_s14, %s3364_s29 }
  0x38   : > { %s4190_s24 = scalar_lea.vmem %s4680_s22, %s3364_s29  ;;  %s845_s20 = scalar_lea.vmem %s4627_s15, %s4181_s25 }
  0x39   : > { %4681 = sst [smem:[#allocation18_spill]] %s4190_s24  ;;  %s4196_s17 = scalar_lea.vmem %s4682_s3, %s3298_s28 }
  0x3a   : > { %4683 = sst [smem:[#allocation19_spill]] %s4196_s17  ;;  %s4201_s23 = scalar_lea.vmem %s4684_s4, %s3364_s29 }
  0x3b   : > { %s4206_s18 = scalar_lea.vmem %s4685_s5, %s3298_s28  ;;  %s4211_s21 = scalar_lea.vmem %s4687_s6, %s3364_s29 }
  0x3c   : > { %4686 = sst [smem:[#allocation20_spill]] %s4206_s18  ;;  %s4216_s0 = scalar_lea.vmem %s4688_s7, %s3298_s28 }
  0x3d   : > { %s3367_s3 = sshll.u32 %s4181_s25, 5  ;;  %s4693_s24 = sld [smem:[#allocation33_spill]] }
  0x3e   : > { %s4222_s27 = scalar_lea.vmem %s4689_s8, %s3367_s3  ;;  %s4239_s7 = scalar_lea.vmem %s4692_s12, %s3367_s3 }
  0x3f   : > { %4690 = sst [smem:[#allocation21_spill]] %s4222_s27  ;;  %s837_s8 = scalar_lea.vmem %s4625_s13, %s4181_s25 }
  0x40   : > { %s4694_s30 = sld [smem:[#allocation34_spill]]  ;;  %s4262_s11 = scalar_lea.vmem [#allocation2], %s3294_s19 }
  0x41   : > { %s4695_s17 = sld [smem:[#allocation8_spill]] }
  0x43   : > { %s848_s26 = scalar_lea.vmem %s4693_s24, %s4181_s25 }
  0x46   : > { %s851_s12 = scalar_lea.vmem %s4694_s30, %s4181_s25 }
  0x47   : > { %p3311_p0 = scmp.ne.s32.totalorder %s4695_s17, 0 }
  0x48   : > { %v856_v0 = vld [vmem:[%s788_s2] sm:$0xff] (!%p3311_p0)  ;;  %s4696_s16 = sld [smem:[#allocation23_spill]] (!%p3311_p0)  ;;  %vm859_vm0 = vcmask (!%p3311_p0), 261120  }
  0x49   : > { %855 = sbr.rel (%p3311_p0) target bundleno = 82 (0x52), region = 96 }
  0x4e   : > { %v857_v1 = vld [vmem:[%s4696_s16] sm:$0xff] (!%p3311_p0) }
  0x4f   : > { %v858_v2 = vadd.f32 (!%p3311_p0), %v857_v1, %v856_v0 }
  0x51   : > { %860 = vst.msk [vmem:[%s4262_s11] sm:$0xff] %vm859_vm0, %v858_v2 }
  0x52 PF: > { %s4697_s24 = sld [smem:[#allocation18_spill]]  ;;  %v4006_v6 = vmov 0.0|0.0   ;;  %vm4007_vm1 = vmmov 0   ;;  %v4008_v14 = vmov 0.0   ;;  %v1194_v19 = vld [vmem:[%s4201_s23 + $0x20] sm:$0xff]  ;;  %v1195_v20 = vld [vmem:[%s4201_s23 + $0x28] sm:$0xff]  ;;  %s4701_s4 = scalar_lea.vmem %s4621_s9, %s4181_s25 }
  0x53   : > { %3714 = vmatprep.subr.bf16.mxu0 %v4006_v6  ;;  %3732 = vmatprep.subr.bf16.mxu1 %v4006_v6  ;;  %vm906_vm2 = vcmask 261120   ;;  %v3745_v23 = vpack.c.bf16 %v1195_v20, %v1194_v19  ;;  %v1196_v26 = vld [vmem:[%s4201_s23 + $0x30] sm:$0xff]  ;;  %v1197_v27 = vld [vmem:[%s4201_s23 + $0x38] sm:$0xff]  ;;  %v1202_v32 = vld [vmem:[%s4201_s23 + $0x60] sm:$0xff]  ;;  %s4698_s19 = sld [smem:[#allocation20_spill]]  ;;  %s4699_s2 = sld [smem:[#allocation19_spill]] }
  0x54   : > { %3484 = vmatprep.mubr.msk.f32.mxu0 %vm4007_vm1, %v4008_v14  ;;  %3517 = vmatprep.mubr.msk.f32.mxu1 %vm4007_vm1, %v4008_v14  ;;  %v3748_v29 = vpack.c.bf16 %v1197_v27, %v1196_v26  ;;  %v1203_v33 = vld [vmem:[%s4201_s23 + $0x68] sm:$0xff]  ;;  %v1204_v38 = vld [vmem:[%s4201_s23 + $0x70] sm:$0xff]  ;;  %v1205_v39 = vld [vmem:[%s4201_s23 + $0x78] sm:$0xff]  ;;  %vm1838_vm3 = vcmask 64512   ;;  %s4702_s18 = scalar_lea.vmem %s4622_s10, %s4181_s25  ;;  %s4703_s28 = sld [smem:[#allocation31_spill]] }
  0x55   : > { %v3757_v35 = vpack.c.bf16 %v1203_v33, %v1202_v32  ;;  %v3760_v41 = vpack.c.bf16 %v1205_v39, %v1204_v38  ;;  %v1190_v42 = vld [vmem:[%s4201_s23] sm:$0xff]  ;;  %v1191_v43 = vld [vmem:[%s4201_s23 + $0x8] sm:$0xff]  ;;  %v1192_v47 = vld [vmem:[%s4201_s23 + $0x10] sm:$0xff] }
  0x56   : > { %v1518_v44 = vld [vmem:[%s4211_s21 + $0x20] sm:$0xff]  ;;  %v1519_v45 = vld [vmem:[%s4211_s21 + $0x28] sm:$0xff]  ;;  %v3739_v46 = vpack.c.bf16 %v1191_v43, %v1190_v42  ;;  %v1193_v48 = vld [vmem:[%s4201_s23 + $0x18] sm:$0xff] }
  0x57   : > { %v3769_v49 = vpack.c.bf16 %v1519_v45, %v1518_v44  ;;  %v3742_v50 = vpack.c.bf16 %v1193_v48, %v1192_v47  ;;  %v1198_v51 = vld [vmem:[%s4201_s23 + $0x40] sm:$0xff]  ;;  %v1199_v52 = vld [vmem:[%s4201_s23 + $0x48] sm:$0xff]  ;;  %v1200_v54 = vld [vmem:[%s4201_s23 + $0x50] sm:$0xff] }
  0x58   : > { %v862_v3 = vld [vmem:[%s4697_s24] sm:$0xff]  ;;  %v863_v4 = vld [vmem:[%s4697_s24 + $0x8] sm:$0xff]  ;;  %v864_v9 = vld [vmem:[%s4697_s24 + $0x10] sm:$0xff]  ;;  %v3751_v53 = vpack.c.bf16 %v1199_v52, %v1198_v51 }
  0x59   : > { %v874_v5 = vld [vmem:[%s4697_s24 + $0x60] sm:$0xff]  ;;  %v3715_v7 = vpack.c.bf16 %v863_v4, %v862_v3  ;;  %v875_v8 = vld [vmem:[%s4697_s24 + $0x68] sm:$0xff]  ;;  %v865_v10 = vld [vmem:[%s4697_s24 + $0x18] sm:$0xff] }
  0x5a   : > { %v3733_v11 = vpack.c.bf16 %v875_v8, %v874_v5  ;;  %v876_v12 = vld [vmem:[%s4697_s24 + $0x70] sm:$0xff]  ;;  %v877_v13 = vld [vmem:[%s4697_s24 + $0x78] sm:$0xff]  ;;  %v3718_v15 = vpack.c.bf16 %v865_v10, %v864_v9  ;;  %v866_v17 = vld [vmem:[%s4697_s24 + $0x20] sm:$0xff]  ;;  %s4704_s3 = scalar_lea.vmem %s4703_s28, %s4181_s25 }
  0x5b   : > { %3716 = vmatpush3.bf16.msra.mxu0 %v3715_v7  ;;  %v3736_v16 = vpack.c.bf16 %v877_v13, %v876_v12  ;;  %v867_v18 = vld [vmem:[%s4697_s24 + $0x28] sm:$0xff]  ;;  %v868_v24 = vld [vmem:[%s4697_s24 + $0x30] sm:$0xff]  ;;  %v869_v25 = vld [vmem:[%s4697_s24 + $0x38] sm:$0xff] }
  0x5c   : > { %3734 = vmatpush3.bf16.msra.mxu1 %v3733_v11  ;;  %3717 = vmatprep.subr.bf16.mxu0 %v4006_v6  ;;  %v4290_v21 = vld [vmem:[%s4262_s11] sm:$0xff]  ;;  %v3721_v22 = vpack.c.bf16 %v867_v18, %v866_v17  ;;  %v3724_v28 = vpack.c.bf16 %v869_v25, %v868_v24  ;;  %v872_v36 = vld [vmem:[%s4697_s24 + $0x50] sm:$0xff]  ;;  %v873_v37 = vld [vmem:[%s4697_s24 + $0x58] sm:$0xff] }
  0x5d   : > { %3735 = vmatprep.subr.bf16.mxu1 %v4006_v6  ;;  %v870_v30 = vld [vmem:[%s4697_s24 + $0x40] sm:$0xff]  ;;  %v871_v31 = vld [vmem:[%s4697_s24 + $0x48] sm:$0xff]  ;;  %v3730_v40 = vpack.c.bf16 %v873_v37, %v872_v36  ;;  %v1201_v55 = vld [vmem:[%s4201_s23 + $0x58] sm:$0xff]  ;;  %s4700_s23 = sld [smem:[#allocation21_spill]] }
  0x5e   : > { %v3727_v34 = vpack.c.bf16 %v871_v31, %v870_v30  ;;  %v3754_v56 = vpack.c.bf16 %v1201_v55, %v1200_v54  ;;  %v1520_v57 = vld [vmem:[%s4211_s21 + $0x30] sm:$0xff]  ;;  %v1521_v58 = vld [vmem:[%s4211_s21 + $0x38] sm:$0xff]  ;;  %v1514_v60 = vld [vmem:[%s4211_s21] sm:$0xff] }
  0x5f   : > { %3719 = vmatpush3.bf16.msra.mxu0 %v3718_v15  ;;  %v3772_v59 = vpack.c.bf16 %v1521_v58, %v1520_v57  ;;  %v1515_v61 = vld [vmem:[%s4211_s21 + $0x8] sm:$0xff]  ;;  %v1526_v62 = vld [vmem:[%s4211_s21 + $0x60] sm:$0xff]  ;;  %v1516_v2 = vld [vmem:[%s4211_s21 + $0x10] sm:$0xff] }
  0x60   : > { %3737 = vmatpush3.bf16.msra.mxu1 %v3736_v16  ;;  %3720 = vmatprep.subr.bf16.mxu0 %v4006_v6  ;;  %v3763_v63 = vpack.c.bf16 %v1515_v61, %v1514_v60  ;;  %v1527_v0 = vld [vmem:[%s4211_s21 + $0x68] sm:$0xff]  ;;  %v1517_v3 = vld [vmem:[%s4211_s21 + $0x18] sm:$0xff]  ;;  %v1528_v5 = vld [vmem:[%s4211_s21 + $0x70] sm:$0xff] }
  0x61   : > { %3744 = vmatprep.subr.bf16.mxu1 %v4006_v6  ;;  %v3781_v1 = vpack.c.bf16 %v1527_v0, %v1526_v62  ;;  %v3766_v4 = vpack.c.bf16 %v1517_v3, %v1516_v2  ;;  %v1529_v7 = vld [vmem:[%s4211_s21 + $0x78] sm:$0xff]  ;;  %v1522_v9 = vld [vmem:[%s4211_s21 + $0x40] sm:$0xff]  ;;  %v1523_v10 = vld [vmem:[%s4211_s21 + $0x48] sm:$0xff] }
  0x62   : > { %3485 = vmatmul.mubr.msk.f32.vlgmr.msra.gmra.mrb[0].mxu0 %vm906_vm2, %v4290_v21  ;;  %v3784_v8 = vpack.c.bf16 %v1529_v7, %v1528_v5  ;;  %v3775_v11 = vpack.c.bf16 %v1523_v10, %v1522_v9  ;;  %v1524_v12 = vld [vmem:[%s4211_s21 + $0x50] sm:$0xff]  ;;  %v1525_v13 = vld [vmem:[%s4211_s21 + $0x58] sm:$0xff]  ;;  %v3323_v25 = vld [vmem:[%s4698_s19 + $0x3] ss:$0 sm:$0xff] }
  0x63   : > { %3722 = vmatpush3.bf16.msra.mxu0 %v3721_v22  ;;  %3518 = vmatmul.mubr.msk.f32.vlgmr.msra.gmra.mrb[0].mxu1 %vm906_vm2, %v4290_v21  ;;  %v3778_v15 = vpack.c.bf16 %v1525_v13, %v1524_v12  ;;  %v3315_v26 = vld [vmem:[%s4699_s2 + $0x3] ss:$0 sm:$0xff]  ;;  %v3320_v33 = vld [vmem:[%s4698_s19] ss:$0 sm:$0xff]  ;;  %v3322_v42 = vld [vmem:[%s4698_s19 + $0x2] ss:$0 sm:$0xff] }
  0x64   : > { %3746 = vmatpush3.bf16.msra.mxu1 %v3745_v23  ;;  %3723 = vmatprep.subr.bf16.mxu0 %v4006_v6  ;;  %v3312_v36 = vld [vmem:[%s4699_s2] ss:$0 sm:$0xff]  ;;  %v3314_v45 = vld [vmem:[%s4699_s2 + $0x2] ss:$0 sm:$0xff] }
  0x65   : > { %3747 = vmatprep.subr.bf16.mxu1 %v4006_v6  ;;  %3495 = vmatprep.mubr.msk.f32.mxu0 %vm4007_vm1, %v4008_v14 }
  0x66   : > { %3539 = vmatprep.mubr.msk.f32.mxu1 %vm4007_vm1, %v4008_v14 }
  0x67   : > { %3725 = vmatpush3.bf16.msra.mxu0 %v3724_v28 }
  0x68   : > { %3749 = vmatpush3.bf16.msra.mxu1 %v3748_v29  ;;  %3726 = vmatprep.subr.bf16.mxu0 %v4006_v6 }
  0x69   : > { %3756 = vmatprep.subr.bf16.mxu1 %v4006_v6 }
  0x6a   : > { %3496 = vmatmul.mubr.msk.f32.vlgmr.msra.gmra.mrb[2].mxu0 %vm906_vm2, %v4290_v21 }
  0x6b   : > { %3728 = vmatpush3.bf16.msra.mxu0 %v3727_v34  ;;  %3540 = vmatmul.mubr.msk.f32.vlgmr.msra.gmra.mrb[2].mxu1 %vm906_vm2, %v4290_v21  ;;  %v3321_v34 = vld [vmem:[%s4698_s19 + $0x1] ss:$0 sm:$0xff] }
  0x6c   : > { %3758 = vmatpush3.bf16.msra.mxu1 %v3757_v35  ;;  %3729 = vmatprep.subr.bf16.mxu0 %v4006_v6 }
  0x6d   : > { %3759 = vmatprep.subr.bf16.mxu1 %v4006_v6  ;;  %3506 = vmatprep.mubr.msk.f32.mxu0 %vm4007_vm1, %v4008_v14 }
  0x6e   : > { %3561 = vmatprep.mubr.msk.f32.mxu1 %vm4007_vm1, %v4008_v14 }
  0x6f   : > { %3731 = vmatpush3.bf16.msra.mxu0 %v3730_v40 }
  0x70   : > { %3761 = vmatpush3.bf16.msra.mxu1 %v3760_v41  ;;  %3738 = vmatprep.subr.bf16.mxu0 %v4006_v6  ;;  %v3313_v41 = vld [vmem:[%s4699_s2 + $0x1] ss:$0 sm:$0xff] }
  0x71   : > { %3768 = vmatprep.subr.bf16.mxu1 %v4006_v6 }
  0x72   : > { %3507 = vmatmul.mubr.msk.f32.vlgmr.msra.gmra.mrb[4].mxu0 %vm906_vm2, %v4290_v21 }
  0x73   : > { %3740 = vmatpush3.bf16.msra.mxu0 %v3739_v46  ;;  %3562 = vmatmul.mubr.msk.f32.vlgmr.msra.gmra.mrb[4].mxu1 %vm906_vm2, %v4290_v21 }
  0x74   : > { %3741 = vmatprep.subr.bf16.mxu0 %v4006_v6  ;;  %3528 = vmatprep.mubr.msk.f32.mxu0 %vm4007_vm1, %v4008_v14 }
  0x75   : > { %3770 = vmatpush3.bf16.msra.mxu1 %v3769_v49  ;;  %3583 = vmatprep.mubr.msk.f32.mxu1 %vm4007_vm1, %v4008_v14  ;;  %v3329_v49 = vld [vmem:[%s4216_s0 + $0x1] ss:$0 sm:$0xff] }
  0x76   : > { %3771 = vmatprep.subr.bf16.mxu1 %v4006_v6 }
  0x77   : > { %3743 = vmatpush3.bf16.msra.mxu0 %v3742_v50 }
  0x78   : > { %3750 = vmatprep.subr.bf16.mxu0 %v4006_v6 }
  0x79   : > { %3773 = vmatpush3.bf16.msra.mxu1 %v3772_v59 }
  0x7a   : > { %3529 = vmatmul.mubr.msk.f32.vlgmr.msra.gmra.mrb[6].mxu0 %vm906_vm2, %v4290_v21  ;;  %3780 = vmatprep.subr.bf16.mxu1 %v4006_v6 }
  0x7b   : > { %3752 = vmatpush3.bf16.msra.mxu0 %v3751_v53  ;;  %3550 = vmatprep.mubr.msk.f32.mxu0 %vm4007_vm1, %v4008_v14  ;;  %v3328_v53 = vld [vmem:[%s4216_s0] ss:$0 sm:$0xff] }
  0x7c   : > { %3753 = vmatprep.subr.bf16.mxu0 %v4006_v6  ;;  %3584 = vmatmul.mubr.msk.f32.vlgmr.msra.gmra.mrb[6].mxu1 %vm906_vm2, %v4290_v21 }
  0x7d   : > { %3782 = vmatpush3.bf16.msra.mxu1 %v3781_v1  ;;  %3605 = vmatprep.mubr.msk.f32.mxu1 %vm4007_vm1, %v4008_v14 }
  0x7e   : > { %3783 = vmatprep.subr.bf16.mxu1 %v4006_v6 }
  0x7f   : > { %3755 = vmatpush3.bf16.msra.mxu0 %v3754_v56 }
  0x80   : > { %3762 = vmatprep.subr.bf16.mxu0 %v4006_v6 }
  0x81   : > { %3785 = vmatpush3.bf16.msra.mxu1 %v3784_v8 }
  0x82   : > { %3551 = vmatmul.mubr.msk.f32.vlgmr.msra.gmra.mrb[8].mxu0 %vm906_vm2, %v4290_v21  ;;  %3623 = vmatprep.subr.mxu1 %v4008_v14 }
  0x83   : > { %3572 = vmatprep.mubr.msk.f32.mxu0 %vm4007_vm1, %v4008_v14  ;;  %3764 = vmatpush3.bf16.msra.mxu0 %v3763_v63 }
  0x84   : > { %3765 = vmatprep.subr.bf16.mxu0 %v4006_v6  ;;  %3606 = vmatmul.mubr.msk.f32.vlgmr.msra.gmra.mrb[8].mxu1 %vm906_vm2, %v4290_v21 }
  0x85   : > { %3625 = vmatprep.mubr.msk.f32.mxu1 %vm4007_vm1, %v4008_v14 }
  0x87   : > { %3767 = vmatpush3.bf16.msra.mxu0 %v3766_v4 }
  0x88   : > { %3774 = vmatprep.subr.bf16.mxu0 %v4006_v6 }
  0x8a   : > { %3573 = vmatmul.mubr.msk.f32.vlgmr.msra.gmra.mrb[10].mxu0 %vm906_vm2, %v4290_v21 }
  0x8b   : > { %3776 = vmatpush3.bf16.msra.mxu0 %v3775_v11  ;;  %3594 = vmatprep.mubr.msk.f32.mxu0 %vm4007_vm1, %v4008_v14 }
  0x8c   : > { %3777 = vmatprep.subr.bf16.mxu0 %v4006_v6 }
  0x8f   : > { %3779 = vmatpush3.bf16.msra.mxu0 %v3778_v15 }
  0x90   : > { %3608 = vmatprep.subr.mxu0 %v4008_v14 }
  0x92   : > { %3595 = vmatmul.mubr.msk.f32.vlgmr.msra.gmra.mrb[12].mxu0 %vm906_vm2, %v4290_v21 }
  0x93   : > { %3610 = vmatprep.mubr.msk.f32.mxu0 %vm4007_vm1, %v4008_v14 }
 0x135   : > { %v976_v16 = vpop.f32.mrb[0].mxu0 }
 0x136   : > { %v3486_v17 = vpop.f32.mrb[1].mxu0  ;;  %v1186_v18 = vpop.f32.mrb[0].mxu1  ;;  %v977_v40 = vadd.f32 %v3312_v36, %v976_v16 }
 0x137   : > { %v3519_v19 = vpop.f32.mrb[1].mxu1  ;;  %v1187_v32 = vadd.f32 %v3315_v26, %v1186_v18 }
 0x13d   : > { %v1046_v20 = vpop.f32.mrb[2].mxu0 }
 0x13e   : > { %v3497_v22 = vpop.f32.mrb[3].mxu0  ;;  %v1370_v23 = vpop.f32.mrb[2].mxu1  ;;  %v1047_v43 = vadd.f32 %v3313_v41, %v1046_v20 }
 0x13f   : > { %v3541_v24 = vpop.f32.mrb[3].mxu1  ;;  %v1371_v39 = vadd.f32 %v3321_v34, %v1370_v23 }
 0x145   : > { %v1116_v27 = vpop.f32.mrb[4].mxu0 }
 0x146   : > { %v3508_v28 = vpop.f32.mrb[5].mxu0  ;;  %v1510_v29 = vpop.f32.mrb[4].mxu1  ;;  %v1117_v48 = vadd.f32 %v3314_v45, %v1116_v27 }
 0x147   : > { %v1511_v30 = vadd.f32 %v3323_v25, %v1510_v29  ;;  %v3563_v31 = vpop.f32.mrb[5].mxu1 }
 0x149   : > { %3624 = vmatpush3.xpose.msk.msra.mxu1 %vm1838_vm3, %v1511_v30 }
 0x14a   : > { %3633 = vmatprep.subr.mxu1 %v4008_v14 }
 0x14c   : > { %3626 = vmatmul.mubr.msk.f32.vlgmr.msra.gmra.mrb[10].mxu1 %vm1838_vm3, %v1187_v32 }
 0x14d   : > { %v1300_v35 = vpop.f32.mrb[6].mxu0  ;;  %3635 = vmatprep.mubr.msk.f32.mxu1 %vm4007_vm1, %v4008_v14 }
 0x14e   : > { %v1301_v37 = vadd.f32 %v3320_v33, %v1300_v35  ;;  %v3530_v38 = vpop.f32.mrb[7].mxu0 }
 0x14f   : > { %v1694_v50 = vpop.f32.mrb[6].mxu1 }
 0x150   : > { %3609 = vmatpush3.xpose.msk.msra.mxu0 %vm1838_vm3, %v1301_v37  ;;  %v1695_v51 = vadd.f32 %v3329_v49, %v1694_v50  ;;  %v3585_v52 = vpop.f32.mrb[7].mxu1 }
 0x151   : > { %3613 = vmatprep.subr.mxu0 %v4008_v14  ;;  %v2483_v52 = vld [vmem:[%s4700_s23] sm:$0xff] }
 0x152   : > { %3634 = vmatpush3.msra.mxu1 %v1695_v51 }
 0x153   : > { %3611 = vmatmul.mubr.msk.f32.vlgmr.msra.gmra.mrb[14].mxu0 %vm1838_vm3, %v977_v40  ;;  %3643 = vmatprep.subr.mxu1 %v4008_v14 }
 0x154   : > { %3614 = vmatpush3.xpose.msk.msra.mxu0 %vm1838_vm3, %v1371_v39  ;;  %3615 = vmatprep.mubr.msk.f32.mxu0 %vm4007_vm1, %v4008_v14  ;;  %v3330_v39 = vld [vmem:[%s4216_s0 + $0x2] ss:$0 sm:$0xff] }
 0x155   : > { %v1440_v44 = vpop.f32.mrb[8].mxu0  ;;  %3618 = vmatprep.subr.mxu0 %v4008_v14 }
 0x156   : > { %v1441_v46 = vadd.f32 %v3322_v42, %v1440_v44  ;;  %v3552_v47 = vpop.f32.mrb[9].mxu0  ;;  %v3331_v44 = vld [vmem:[%s4216_s0 + $0x3] ss:$0 sm:$0xff] }
 0x157   : > { %3616 = vmatmul.mubr.msk.f32.vlgmr.msra.gmra.mrb[16].mxu0 %vm1838_vm3, %v1047_v43  ;;  %v4429_v57 = vpop.f32.mrb[8].mxu1 }
 0x158   : > { %3619 = vmatpush3.xpose.msk.msra.mxu0 %vm1838_vm3, %v1441_v46  ;;  %3620 = vmatprep.mubr.msk.f32.mxu0 %vm4007_vm1, %v4008_v14  ;;  %v3607_v58 = vpop.f32.mrb[9].mxu1  ;;  %v1835_v47 = vadd.f32 %v3331_v44, %v4429_v57  ;;  %v2486_v57 = vld [vmem:[%s4700_s23 + $0x18] sm:$0xff]  ;;  %v2919_v44 = vld [vmem:[%s4248_s1 + $0x48] sm:$0xff] }
 0x159   : > { %3628 = vmatprep.subr.mxu0 %v4008_v14 }
 0x15b   : > { %3621 = vmatmul.mubr.msk.f32.vlgmr.msra.gmra.mrb[18].mxu0 %vm1838_vm3, %v1117_v48 }
 0x15c   : > { %3630 = vmatprep.mubr.msk.f32.mxu0 %vm4007_vm1, %v4008_v14 }
 0x15d   : > { %v1624_v54 = vpop.f32.mrb[10].mxu0 }
 0x15e   : > { %v1625_v55 = vadd.f32 %v3328_v53, %v1624_v54  ;;  %v3574_v56 = vpop.f32.mrb[11].mxu0  ;;  %v2484_v53 = vld [vmem:[%s4700_s23 + $0x8] sm:$0xff]  ;;  %v2485_v54 = vld [vmem:[%s4700_s23 + $0x10] sm:$0xff] }
 0x160   : > { %3629 = vmatpush3.msra.mxu0 %v1625_v55 }
 0x161   : > { %3638 = vmatprep.subr.mxu0 %v4008_v14 }
 0x165   : > { %v1764_v59 = vpop.f32.mrb[12].mxu0 }
 0x166   : > { %v3596_v60 = vpop.f32.mrb[13].mxu0  ;;  %v1765_v43 = vadd.f32 %v3330_v39, %v1764_v59 }
 0x21f   : > { %v2139_v61 = vpop.f32.mrb[10].mxu1 }
 0x220   : > { %v3627_v62 = vpop.f32.mrb[11].mxu1  ;;  %v2146_v11 = vmul.f32 0.35355338, %v2139_v61 }
 0x222   : > { %v2156_v13 = vsel %vm1838_vm3, %v2146_v11, -inf }
 0x226   : > { %v1911_v63 = vpop.f32.mrb[14].mxu0 }
 0x227   : > { %v2143_v0 = vmul.f32 0.35355338, %v1911_v63  ;;  %v3612_v1 = vpop.f32.mrb[15].mxu0 }
 0x229   : > { %v2147_v2 = vsel %vm1838_vm3, %v2143_v0, -inf }
 0x22a   : > { %2148 = vmax.xlane.f32.xlu0 %v2147_v2  ;;  %v1987_v3 = vpop.f32.mrb[16].mxu0 }
 0x22b   : > { %v2144_v4 = vmul.f32 0.35355338, %v1987_v3  ;;  %v3617_v5 = vpop.f32.mrb[17].mxu0 }
 0x22d   : > { %v2150_v7 = vsel %vm1838_vm3, %v2144_v4, -inf }
 0x22e   : > { %2151 = vmax.xlane.f32.xlu0 %v2150_v7  ;;  %v2063_v8 = vpop.f32.mrb[18].mxu0 }
 0x22f   : > { %v2145_v9 = vmul.f32 0.35355338, %v2063_v8  ;;  %v3622_v10 = vpop.f32.mrb[19].mxu0 }
 0x231   : > { %v2153_v12 = vsel %vm1838_vm3, %v2145_v9, -inf }
 0x232   : > { %2154 = vmax.xlane.f32.xlu1 %v2153_v12 }
 0x236   : > { %2157 = vmax.xlane.f32.xlu1 %v2156_v13 }
 0x2b7   : > { %v2149_v15 = vpop.xlane.xlu0 %2148 }
 0x2b8   : > { %v2159_v16 = vsub.f32 %v2143_v0, %v2149_v15 }
 0x2ba   : > { %v2163_v17 = vmul.f32 1.442695, %v2159_v16 }
 0x2bb   : > { %v2152_v18 = vpop.xlane.xlu0 %2151 }
 0x2bc   : > { %3890 = vpow2.f32 %v2163_v17  ;;  %v2160_v19 = vsub.f32 %v2144_v4, %v2152_v18 }
 0x2be   : > { %v2165_v20 = vmul.f32 1.442695, %v2160_v19 }
 0x2bf   : > { %v2155_v22 = vpop.xlane.xlu1 %2154 }
 0x2c0   : > { %3892 = vpow2.f32 %v2165_v20  ;;  %v2161_v23 = vsub.f32 %v2145_v9, %v2155_v22 }
 0x2c2   : > { %v2167_v24 = vmul.f32 1.442695, %v2161_v23 }
 0x2c3   : > { %v2158_v25 = vpop.xlane.xlu1 %2157 }
 0x2c4   : > { %3894 = vpow2.f32 %v2167_v24  ;;  %v2162_v26 = vsub.f32 %v2146_v11, %v2158_v25 }
 0x2c6   : > { %v3891_v27 = vpop.eup %3890  ;;  %v2169_v28 = vmul.f32 1.442695, %v2162_v26  ;;  %v2825_v26 = vld [vmem:[%s4239_s7] sm:$0xff] }
 0x2c7   : > { %v2171_v29 = vsel %vm1838_vm3, %v3891_v27, 0.0 }
 0x2c8   : > { %3896 = vpow2.f32 %v2169_v28  ;;  %2172 = vadd.xlane.f32.xlu0 %v2171_v29  ;;  %v2828_v29 = vld [vmem:[%s4239_s7 + $0x18] sm:$0xff] }
 0x2ca   : > { %v3893_v30 = vpop.eup %3892 }
 0x2cb   : > { %v2174_v31 = vsel %vm1838_vm3, %v3893_v30, 0.0 }
 0x2cc   : > { %2175 = vadd.xlane.f32.xlu1 %v2174_v31  ;;  %v2910_v31 = vld [vmem:[%s4248_s1] sm:$0xff] }
 0x2ce   : > { %v3895_v32 = vpop.eup %3894 }
 0x2cf   : > { %v2177_v33 = vsel %vm1838_vm3, %v3895_v32, 0.0 }
 0x2d0   : > { %2178 = vadd.xlane.f32.xlu0 %v2177_v33  ;;  %v2912_v33 = vld [vmem:[%s4248_s1 + $0x10] sm:$0xff] }
 0x2d2   : > { %v3897_v34 = vpop.eup %3896 }
 0x2d3   : > { %v2180_v35 = vsel %vm1838_vm3, %v3897_v34, 0.0 }
 0x2d4   : > { %2181 = vadd.xlane.f32.xlu1 %v2180_v35  ;;  %v2913_v35 = vld [vmem:[%s4248_s1 + $0x18] sm:$0xff] }
 0x355   : > { %v2173_v36 = vpop.xlane.xlu0 %2172 }
 0x356   : > { %3898 = vrcp.f32 %v2173_v36  ;;  %v3796_v36 = vpack.c.bf16 %v2913_v35, %v2912_v33 }
 0x359   : > { %v2176_v37 = vpop.xlane.xlu1 %2175 }
 0x35a   : > { %3900 = vrcp.f32 %v2176_v37  ;;  %v2914_v37 = vld [vmem:[%s4248_s1 + $0x20] sm:$0xff] }
 0x35d   : > { %v2179_v38 = vpop.xlane.xlu0 %2178 }
 0x35e   : > { %3902 = vrcp.f32 %v2179_v38  ;;  %v2915_v38 = vld [vmem:[%s4248_s1 + $0x28] sm:$0xff] }
 0x35f   : > { %v3799_v39 = vpack.c.bf16 %v2915_v38, %v2914_v37 }
 0x360   : > { %v3899_v40 = vpop.eup %3898 }
 0x361   : > { %v2187_v41 = vmul.f32 %v3899_v40, %v3891_v27  ;;  %v2182_v42 = vpop.xlane.xlu1 %2181  ;;  %v2826_v27 = vld [vmem:[%s4239_s7 + $0x8] sm:$0xff]  ;;  %v2916_v40 = vld [vmem:[%s4248_s1 + $0x30] sm:$0xff] }
 0x362   : > { %3904 = vrcp.f32 %v2182_v42  ;;  %v3787_v28 = vpack.c.bf16 %v2826_v27, %v2825_v26 }
 0x363   : > { %3631 = vmatmul.mubr.msk.f32.vlgmr.msra.gmra.mrb[20].mxu0 %vm1838_vm3, %v2187_v41  ;;  %v2917_v41 = vld [vmem:[%s4248_s1 + $0x38] sm:$0xff] }
 0x364   : > { %v3901_v45 = vpop.eup %3900  ;;  %3639 = vmatpush3.msra.mxu0 %v1765_v43  ;;  %3640 = vmatprep.mubr.msk.f32.mxu0 %vm4007_vm1, %v4008_v14  ;;  %v3802_v42 = vpack.c.bf16 %v2917_v41, %v2916_v40  ;;  %v2918_v43 = vld [vmem:[%s4248_s1 + $0x40] sm:$0xff] }
 0x365   : > { %v2188_v46 = vmul.f32 %v3901_v45, %v3893_v30  ;;  %3648 = vmatprep.subr.mxu0 %v4008_v14  ;;  %v3805_v45 = vpack.c.bf16 %v2919_v44, %v2918_v43 }
 0x367   : > { %3636 = vmatmul.mubr.msk.f32.vlgmr.msra.gmra.mrb[12].mxu1 %vm1838_vm3, %v2188_v46  ;;  %v2920_v46 = vld [vmem:[%s4248_s1 + $0x50] sm:$0xff] }
 0x368   : > { %v3903_v48 = vpop.eup %3902  ;;  %3644 = vmatpush3.msra.mxu1 %v1835_v47  ;;  %3645 = vmatprep.mubr.msk.f32.mxu1 %vm4007_vm1, %v4008_v14  ;;  %v2921_v47 = vld [vmem:[%s4248_s1 + $0x58] sm:$0xff] }
 0x369   : > { %v2189_v49 = vmul.f32 %v3903_v48, %v3895_v32  ;;  %3653 = vmatprep.subr.mxu1 %v4008_v14  ;;  %v2911_v32 = vld [vmem:[%s4248_s1 + $0x8] sm:$0xff]  ;;  %v3808_v48 = vpack.c.bf16 %v2921_v47, %v2920_v46 }
 0x36b   : > { %3641 = vmatmul.mubr.msk.f32.vlgmr.msra.gmra.mrb[22].mxu0 %vm1838_vm3, %v2189_v49  ;;  %v2922_v49 = vld [vmem:[%s4248_s1 + $0x60] sm:$0xff] }
 0x36c   : > { %v3905_v50 = vpop.eup %3904  ;;  %3650 = vmatprep.mubr.msk.f32.mxu0 %vm4007_vm1, %v4008_v14  ;;  %3649 = vmatpush3.msra.mxu0 %v2483_v52 }
 0x36d   : > { %v2190_v51 = vmul.f32 %v3905_v50, %v3897_v34  ;;  %3658 = vmatprep.subr.mxu0 %v4008_v14  ;;  %v3793_v34 = vpack.c.bf16 %v2911_v32, %v2910_v31  ;;  %v2923_v50 = vld [vmem:[%s4248_s1 + $0x68] sm:$0xff] }
 0x36f   : > { %3646 = vmatmul.mubr.msk.f32.vlgmr.msra.gmra.mrb[14].mxu1 %vm1838_vm3, %v2190_v51  ;;  %v3811_v51 = vpack.c.bf16 %v2923_v50, %v2922_v49 }
 0x370   : > { %3655 = vmatprep.mubr.msk.f32.mxu1 %vm4007_vm1, %v4008_v14  ;;  %3654 = vmatpush3.msra.mxu1 %v2484_v53 }
 0x371   : > { %3663 = vmatprep.subr.mxu1 %v4008_v14 }
 0x436   : > { %v2260_v55 = vpop.f32.mrb[20].mxu0 }
 0x437   : > { %v3632_v56 = vpop.f32.mrb[21].mxu0  ;;  %3651 = vmatmul.mubr.msk.f32.vlgmr.msra.gmra.mrb[24].mxu0 %vm1838_vm3, %v2260_v55 }
 0x438   : > { %3659 = vmatpush3.msra.mxu0 %v2485_v54  ;;  %3660 = vmatprep.mubr.msk.f32.mxu0 %vm4007_vm1, %v4008_v14  ;;  %v3353_v56 = vld [vmem:[%s4702_s18] ss:$0 sm:$0xff]  ;;  %s4710_s18 = sld [smem:[#allocation35_spill]] }
 0x439   : > { %3786 = vmatprep.subr.bf16.mxu0 %v4006_v6 }
 0x43a   : > { %v2333_v58 = vpop.f32.mrb[12].mxu1 }
 0x43b   : > { %v3637_v59 = vpop.f32.mrb[13].mxu1  ;;  %3656 = vmatmul.mubr.msk.f32.vlgmr.msra.gmra.mrb[16].mxu1 %vm1838_vm3, %v2333_v58  ;;  %v3354_v58 = vld [vmem:[%s4704_s3] ss:$0 sm:$0xff] }
 0x43c   : > { %3664 = vmatpush3.msra.mxu1 %v2486_v57  ;;  %3665 = vmatprep.mubr.msk.f32.mxu1 %vm4007_vm1, %v4008_v14 }
 0x43d   : > { %3792 = vmatprep.subr.bf16.mxu1 %v4006_v6 }
 0x43e   : > { %v2406_v60 = vpop.f32.mrb[22].mxu0 }
 0x43f   : > { %v3642_v61 = vpop.f32.mrb[23].mxu0  ;;  %3661 = vmatmul.mubr.msk.f32.vlgmr.msra.gmra.mrb[26].mxu0 %vm1838_vm3, %v2406_v60  ;;  %v2924_v60 = vld [vmem:[%s4248_s1 + $0x70] sm:$0xff] }
 0x440   : > { %3676 = vmatprep.mubr.msk.f32.mxu0 %vm4007_vm1, %v4008_v14  ;;  %3788 = vmatpush3.bf16.msra.mxu0 %v3787_v28  ;;  %v2925_v61 = vld [vmem:[%s4248_s1 + $0x78] sm:$0xff]  ;;  %s4705_s1 = sld [smem:[#allocation9_spill]] }
 0x441   : > { %3789 = vmatprep.subr.bf16.mxu0 %v4006_v6 }
 0x442   : > { %v2479_v62 = vpop.f32.mrb[14].mxu1 }
 0x443   : > { %v3647_v63 = vpop.f32.mrb[15].mxu1  ;;  %3666 = vmatmul.mubr.msk.f32.vlgmr.msra.gmra.mrb[18].mxu1 %vm1838_vm3, %v2479_v62  ;;  %v3814_v62 = vpack.c.bf16 %v2925_v61, %v2924_v60 }
 0x444   : > { %3711 = vmatprep.mubr.msk.f32.mxu1 %vm4007_vm1, %v4008_v14  ;;  %v3352_v14 = vld [vmem:[%s4701_s4] ss:$0 sm:$0xff]  ;;  %3794 = vmatpush3.bf16.msra.mxu1 %v3793_v34  ;;  %s3048_s4 = sshll.u32 %s4262_s11, 4  ;;  %s4557_s4 = int_to_ptr.vmem [resolvable:$true] %s3048_s4 }
 0x445   : > { %3795 = vmatprep.subr.bf16.mxu1 %v4006_v6  ;;  %v3355_v63 = vld [vmem:[%s837_s8] ss:$0 sm:$0xff]  ;;  %s4706_s8 = sld [smem:[#allocation6_spill]]  ;;  %s3910_s25 = scalar_lea.vmem %s4557_s4, 128 }
 0x446   : > { %s3361_s0 = sshll.u32 %s4705_s1, 7  ;;  %p3911_p1 = scmp.ne.s32.totalorder %s4557_s4, %s3910_s25 }
 0x447   : > { %s4555_s6 = scalar_lea.hbm %s4710_s18, %s3361_s0 }
 0x448   : > { %3797 = vmatpush3.bf16.msra.mxu1 %v3796_v36  ;;  %p3912_p2 = pnand %p3911_p1, %p4154_p3 }
 0x449   : > { %3798 = vmatprep.subr.bf16.mxu1 %v4006_v6 }
 0x44a   : > { %p3913_p4 = pneg %p3912_p2 }
 0x44c   : > { %3800 = vmatpush3.bf16.msra.mxu1 %v3799_v39 }
 0x44d   : > { %3801 = vmatprep.subr.bf16.mxu1 %v4006_v6 }
 0x450   : > { %3803 = vmatpush3.bf16.msra.mxu1 %v3802_v42 }
 0x451   : > { %3804 = vmatprep.subr.bf16.mxu1 %v4006_v6 }
 0x454   : > { %3806 = vmatpush3.bf16.msra.mxu1 %v3805_v45 }
 0x455   : > { %3807 = vmatprep.subr.bf16.mxu1 %v4006_v6 }
 0x458   : > { %3809 = vmatpush3.bf16.msra.mxu1 %v3808_v48 }
 0x459   : > { %3810 = vmatprep.subr.bf16.mxu1 %v4006_v6 }
 0x45c   : > { %3812 = vmatpush3.bf16.msra.mxu1 %v3811_v51 }
 0x45d   : > { %3813 = vmatprep.subr.bf16.mxu1 %v4006_v6 }
 0x460   : > { %3815 = vmatpush3.bf16.msra.mxu1 %v3814_v62 }
 0x50a   : > { %v2556_v0 = vpop.f32.mrb[24].mxu0 }
 0x50b   : > { %v3652_v1 = vpop.f32.mrb[25].mxu0  ;;  %v2779_v3 = vsel %vm906_vm2, %v2556_v0, 0.0 }
 0x50e   : > { %v2629_v2 = vpop.f32.mrb[16].mxu1 }
 0x50f   : > { %v2780_v4 = vsel %vm906_vm2, %v2629_v2, 0.0  ;;  %v3657_v5 = vpop.f32.mrb[17].mxu1 }
 0x510   : > { %v2781_v7 = vadd.f32 %v2780_v4, %v2779_v3  ;;  %v3357_v4 = vld [vmem:[%s845_s20] ss:$0 sm:$0xff] }
 0x512   : > { %v2702_v8 = vpop.f32.mrb[26].mxu0 }
 0x513   : > { %v2782_v9 = vsel %vm906_vm2, %v2702_v8, 0.0  ;;  %v3662_v10 = vpop.f32.mrb[27].mxu0 }
 0x514   : > { %v2783_v11 = vadd.f32 %v2782_v9, %v2781_v7 }
 0x516   : > { %v2775_v12 = vpop.f32.mrb[18].mxu1 }
 0x517   : > { %v2784_v13 = vsel %vm906_vm2, %v2775_v12, 0.0  ;;  %v3667_v15 = vpop.f32.mrb[19].mxu1 }
 0x518   : > { %v2785_v16 = vadd.f32 %v2784_v13, %v2783_v11 }
 0x51a   : > { %v2793_v17 = vadd.f32 %v3352_v14, %v2785_v16 }
 0x51c   : > { %v2794_v18 = vadd.f32 %v2793_v17, %v4290_v21  ;;  %v2827_v21 = vld [vmem:[%s4239_s7 + $0x10] sm:$0xff] }
 0x51d   : > { %v3790_v30 = vpack.c.bf16 %v2828_v29, %v2827_v21 }
 0x51e   : > { %v2797_v19 = vsel %vm906_vm2, %v2794_v18, 0.0 }
 0x51f   : > { %2798 = vadd.xlane.f32.xlu0 %v2797_v19  ;;  %3791 = vmatpush3.bf16.msra.mxu0 %v3790_v30 }
 0x5ac   : > { %v2799_v20 = vpop.xlane.xlu0 %2798 }
 0x5ad   : > { %v2801_v22 = vmul.f32 0.03125, %v2799_v20  ;;  %v3358_v20 = vld [vmem:[%s848_s26] ss:$0 sm:$0xff]  ;;  %s4711_s26 = sand.u32 1, %s4706_s8  }
 0x5ae   : > { %s3035_s22 = scalar_lea.sflag [#allocation3], %s4711_s26 }
 0x5af   : > { %v2802_v23 = vsub.f32 %v2794_v18, %v2801_v22 }
 0x5b1   : > { %v2803_v24 = vmul.f32 %v2802_v23, %v2802_v23 }
 0x5b3   : > { %v2804_v25 = vsel %vm906_vm2, %v2803_v24, 0.0 }
 0x5b4   : > { %2805 = vadd.xlane.f32.xlu1 %v2804_v25 }
 0x641   : > { %v2806_v52 = vpop.xlane.xlu1 %2805 }
 0x642   : > { %v2807_v53 = vmul.f32 0.03125, %v2806_v52 }
 0x644   : > { %v2808_v54 = vadd.f32 1e-05, %v2807_v53 }
 0x646   : > { %3906 = vrsqrt.f32 %v2808_v54 }
 0x650   : > { %v3907_v55 = vpop.eup %3906 }
 0x651   : > { %v2810_v57 = vmul.f32 %v3907_v55, %v2802_v23  ;;  %v3359_v23 = vld [vmem:[%s851_s12] ss:$0 sm:$0xff]  ;;  %s4009_s12 = smov [#allocation2]  }
 0x652   : > { %s3914_s28 = sshll.u32 %s4009_s12, 4  ;;  %s3915_s28 = int_to_ptr.vmem [resolvable:$false] %s3914_s28 }
 0x653   : > { %v2817_v59 = vmul.f32 %v3353_v56, %v2810_v57  ;;  %s3916_s3 = scalar_lea.vmem %s3915_s28, 256  ;;  %p3917_p5 = scmp.lt.s32.totalorder %s4557_s4, %s3915_s28 }
 0x654   : > { %p3918_p6 = scmp.lt.s32.totalorder %s3916_s3, %s3910_s25 }
 0x655   : > { %v2824_v6 = vadd.f32 %v3354_v58, %v2817_v59 }
 0x656   : > { %p3919_p7 = por %p3918_p6, %p3917_p5 }
 0x657   : > { %3677 = vmatmul.mubr.msk.f32.vlgmr.msra.gmra.mrb[28].mxu0 %vm906_vm2, %v2824_v6 }
 0x658   : > { %p3920_p8 = pnand %p3919_p7, %p3913_p4 }
 0x72a   : > { %v2905_v0 = vpop.f32.mrb[28].mxu0 }
 0x72b   : > { %v2906_v1 = vadd.f32 %v3355_v63, %v2905_v0  ;;  %v3678_v2 = vpop.f32.mrb[29].mxu0 }
 0x72d   : > { %v2909_v3 = vmax.f32 %v2906_v1, 0.0 }
 0x72f   : > { %3712 = vmatmul.mubr.f32.vlgmr.msra.gmra.mrb[20].mxu1 %v2909_v3 }
 0x802   : > { %v2999_v5 = vpop.f32.mrb[20].mxu1 }
 0x803   : > { %v3000_v7 = vadd.f32 %v3357_v4, %v2999_v5  ;;  %v3713_v8 = vpop.f32.mrb[21].mxu1 }
 0x805   : > { %v3003_v9 = vadd.f32 %v3000_v7, %v2824_v6 }
 0x807   : > { %v3006_v10 = vsel %vm906_vm2, %v3003_v9, 0.0 }
 0x808   : > { %3007 = vadd.xlane.f32.xlu0 %v3006_v10 }
 0x895   : > { %v3008_v11 = vpop.xlane.xlu0 %3007 }
 0x896   : > { %v3009_v12 = vmul.f32 0.03125, %v3008_v11 }
 0x898   : > { %v3010_v13 = vsub.f32 %v3003_v9, %v3009_v12 }
 0x89a   : > { %v3011_v14 = vmul.f32 %v3010_v13, %v3010_v13 }
 0x89c   : > { %v3012_v15 = vsel %vm906_vm2, %v3011_v14, 0.0 }
 0x89d   : > { %3013 = vadd.xlane.f32.xlu1 %v3012_v15 }
 0x92a   : > { %v3014_v16 = vpop.xlane.xlu1 %3013 }
 0x92b   : > { %v3015_v17 = vmul.f32 0.03125, %v3014_v16 }
 0x92d   : > { %v3016_v18 = vadd.f32 1e-05, %v3015_v17 }
 0x92f   : > { %3908 = vrsqrt.f32 %v3016_v18 }
 0x939   : > { %v3909_v19 = vpop.eup %3908 }
 0x93a   : > { %v3018_v22 = vmul.f32 %v3909_v19, %v3010_v13 }
 0x93c   : > { %v3025_v24 = vmul.f32 %v3358_v20, %v3018_v22 }
 0x93e   : > { %v3032_v25 = vadd.f32 %v3359_v23, %v3025_v24 }
 0x940   : > { %3033 = vst.msk [vmem:[%s4262_s11] sm:$0xff] %vm906_vm2, %v3032_v25 }
 0x941   : > { %3923 = shalt.err (!%p3920_p8)
}
 0x942   : > { %s3924_s11 = scalar_lea.hbm %s4555_s6, 128  ;;  %s3928_s29 = scalar_lea.hbm %s4710_s18, 256 }
 0x943   : > { %p3925_p10 = scmp.ne.s32.totalorder %s4555_s6, %s3924_s11  ;;  %p3929_p13 = scmp.lt.u32.totalorder %s4555_s6, %s4710_s18 }
 0x944   : > { %p3930_p0 = scmp.lt.u32.totalorder %s3928_s29, %s3924_s11  ;;  %p3932_p2 = scmp.lt.u32.totalorder %s3924_s11, %s4555_s6 }
 0x945   : > { %p3926_p11 = pnand %p3925_p10, %p4154_p3 }
 0x946   : > { %p3931_p1 = por %p3930_p0, %p3929_p13 }
 0x947   : > { %p3927_p12 = pneg %p3926_p11 }
 0x948   : > { %p3933_p4 = por %p3932_p2, %p3931_p1 }
 0x94a   : > { %p3934_p5 = pnand %p3933_p4, %p3927_p12 }
 0x94c   : > { %3937 = shalt.err (!%p3934_p5)
}
 0x94d   : > { %3816 = dma.vmem_to_hbm [thread:$0]  (%p4154_p3), %s4557_s4, 128, %s4555_s6, %s3035_s22  }
 0x94e PF: > { %s4712_s8 = sld [smem:[#allocation12_spill]]  ;;  %s4713_s16 = sld [smem:[#allocation5_spill]] }
 0x954   : > { %p3822_p6 = scmp.ge.s32.totalorder %s4712_s8, 2  ;;  %s3060_s19 = sand.u32 1, %s4713_s16  }
 0x955   : > { %s3061_s2 = scalar_lea.sflag [#allocation3], %s3060_s19 }
 0x956   : > { %p3819_p7 = pnand %p3822_p6, %p4164_p9 }
 0x958   : > { %3971 = dma.done.wait (!%p3819_p7), %s3061_s2, 128  }
 0x959   : > { %3973 = vsyncadd (!%p3819_p7), %s3061_s2, 4294967168  ;;  %s31_s20 = sadd.s32 1, %s4712_s8   ;;  %s4715_s27 = sld [smem:[#allocation6_spill]] }
 0x95a   : > { %p28_p8 = scmp.ge.s32.totalorder %s31_s20, 6   ;;  %s4716_s28 = sld [smem:[#allocation7_spill]] }
 0x95b   : > { %s4717_s29 = sld [smem:[#allocation17_spill]]  ;;  %s4718_s30 = sld [smem:[#allocation10_spill]] }
 0x95c   : > { %s4719_s0 = sld [smem:[#allocation11_spill]]  ;;  %s4720_s19 = sld [smem:[#allocation13_spill]] }
 0x95d   : > { %s4721_s1 = sld [smem:[#allocation15_spill]]  ;;  %30 = sbr.rel (!%p28_p8) target bundleno = 20 (0x14), region = 179 }
 0x964   :  { %3066 = vsyncpa [#allocation3], 1 }
 0x965   :  { %3068 = vsyncpa [#allocation3 + $0x1], 1 }

</bundles_post_ra>
